<compile_context>
chip_gen: v6e
topology: v6e:2x2x1
jax: 0.10.0
libtpu: 0.0.40
codegen_flags: <defaults>
</compile_context>

<pallas_src>
import jax
import jax.numpy as jnp
from jax.experimental import pallas as pl
from jax.experimental.pallas import tpu as pltpu


K_IN = 28 * 28       # 784; fed unpadded (full-extent last dim in the BlockSpec)
N_OUT_PAD = 128      # 10 logits padded to a full lane tile
TB_CAP = 512         # keeps double-buffered x tiles + resident weights well
                     # inside VMEM on v5e/v6e/v7x


def _round_up(n, m):
    return ((n + m - 1) // m) * m


def _pick_tb(batch):
    """Batch tile size.

    * multiple of 16 (bf16 sublane packing)
    * >= 2 grid steps for moderate batches (both v7x TensorCores get work)
    * capped at TB_CAP, sized to minimize batch padding
    """
    b16 = _round_up(max(batch, 1), 16)
    if b16 <= 16:
        return 16
    n_steps = max(2, -(-b16 // TB_CAP))          # ceil division
    return min(TB_CAP, _round_up(-(-b16 // n_steps), 16))


def _mlp_kernel(x_ref,
                w1_ref, b1_ref,
                w2_ref, b2_ref,
                w3_ref, b3_ref,
                w4_ref, b4_ref,
                o_ref):
    # Layer 1: (TB,784)bf16 @ (784,512)bf16 -> f32 acc, bias + ReLU in f32.
    h = jnp.dot(x_ref[...], w1_ref[...], preferred_element_type=jnp.float32)
    h = jnp.maximum(h + b1_ref[...], 0.0)
    # Layer 2: (TB,512) @ (512,256)
    h = jnp.dot(h.astype(jnp.bfloat16), w2_ref[...],
                preferred_element_type=jnp.float32)
    h = jnp.maximum(h + b2_ref[...], 0.0)
    # Layer 3: (TB,256) @ (256,128)
    h = jnp.dot(h.astype(jnp.bfloat16), w3_ref[...],
                preferred_element_type=jnp.float32)
    h = jnp.maximum(h + b3_ref[...], 0.0)
    # Classifier (padded to 128 output lanes): (TB,128) @ (128,128)
    out = jnp.dot(h.astype(jnp.bfloat16), w4_ref[...],
                  preferred_element_type=jnp.float32)
    o_ref[...] = (out + b4_ref[...]).astype(o_ref.dtype)


def mlp_forward(x, params):
    """x: (B, 1, 28, 28) float32 NCHW. Returns logits (B, 10) float32."""
    B = x.shape[0]
    # Flatten and fold the bf16 cast into the same wrapper op: x is the only
    # per-grid-step streamed operand, so this halves its HBM traffic.
    x_flat = x.reshape(B, K_IN).astype(jnp.bfloat16)

    TB = _pick_tb(B)
    B_pad = _round_up(B, TB)
    if B_pad != B:
        # Pad batch rows only (no K padding, no fp32 copy).
        x_flat = jnp.pad(x_flat, ((0, B_pad - B), (0, 0)))

    (w1, b1), (w2, b2), (w3, b3), (w4, b4) = params

    # Weights in bf16 (f32 accumulation in-kernel). Only W4/b4 are padded
    # (10 -> 128 output columns) so the final store is lane-dense.
    w1b = w1.astype(jnp.bfloat16)                              # (784, 512)
    w2b = w2.astype(jnp.bfloat16)                              # (512, 256)
    w3b = w3.astype(jnp.bfloat16)                              # (256, 128)
    w4b = (jnp.zeros((128, N_OUT_PAD), jnp.float32)
           .at[:, :10].set(w4).astype(jnp.bfloat16))           # (128, 128)
    b4p = jnp.zeros((N_OUT_PAD,), jnp.float32).at[:10].set(b4)

    b1r = b1.reshape(1, -1).astype(jnp.float32)
    b2r = b2.reshape(1, -1).astype(jnp.float32)
    b3r = b3.reshape(1, -1).astype(jnp.float32)
    b4r = b4p.reshape(1, -1).astype(jnp.float32)

    grid = (B_pad // TB,)

    def _resident(shape):
        # Constant index_map -> same block every step -> VMEM-resident; a
        # single buffer is enough since it is never re-fetched.
        return pl.BlockSpec(shape, lambda i: (0, 0),
                            pipeline_mode=pl.Buffered(1))

    in_specs = [
        pl.BlockSpec((TB, K_IN), lambda i: (i, 0)),        # x tile (streamed)
        _resident(w1b.shape), _resident(b1r.shape),
        _resident(w2b.shape), _resident(b2r.shape),
        _resident(w3b.shape), _resident(b3r.shape),
        _resident(w4b.shape), _resident(b4r.shape),
    ]
    out_spec = pl.BlockSpec((TB, N_OUT_PAD), lambda i: (i, 0))

    flops = 2 * B_pad * (K_IN * 512 + 512 * 256 + 256 * 128 + 128 * N_OUT_PAD)
    weight_bytes = sum(int(w.size) * 2 for w in (w1b, w2b, w3b, w4b))
    bias_bytes = sum(int(b.size) * 4 for b in (b1r, b2r, b3r, b4r))
    bytes_accessed = (int(x_flat.size) * 2 + weight_bytes + bias_bytes
                      + B_pad * N_OUT_PAD * 2)
    cost = pl.CostEstimate(flops=flops, transcendentals=0,
                           bytes_accessed=bytes_accessed)

    logits_pad = pl.pallas_call(
        _mlp_kernel,
        out_shape=jax.ShapeDtypeStruct((B_pad, N_OUT_PAD), jnp.bfloat16),
        grid=grid,
        in_specs=in_specs,
        out_specs=out_spec,
        compiler_params=pltpu.CompilerParams(
            dimension_semantics=("parallel",),
            vmem_limit_bytes=32 * 1024 * 1024),
        cost_estimate=cost,
    )(x_flat, w1b, b1r, w2b, b2r, w3b, b3r, w4b, b4r)

    return logits_pad[:B, :10].astype(jnp.float32)


def init_params(key):
    """Deterministic init matching the PyTorch layer shapes.

    PyTorch nn.Linear stores weight as (out, in); we store the transpose
    (in, out) so the kernel can do x @ W directly.
    """
    dims = [(K_IN, 512), (512, 256), (256, 128), (128, 10)]
    params = []
    for (fan_in, fan_out) in dims:
        key, kw, kb = jax.random.split(key, 3)
        bound = 1.0 / jnp.sqrt(fan_in)
        w = jax.random.uniform(kw, (fan_in, fan_out), jnp.float32, -bound, bound)
        b = jax.random.uniform(kb, (fan_out,), jnp.float32, -bound, bound)
        params.append((w, b))
    return params


def mlp_reference(x, params):
    """Pure-JAX reference mirroring the kernel's bf16-weight / f32-acc math."""
    B = x.shape[0]
    h = x.reshape(B, K_IN).astype(jnp.float32)
    for i, (w, b) in enumerate(params):
        h = jnp.dot(h.astype(jnp.bfloat16), w.astype(jnp.bfloat16),
                    preferred_element_type=jnp.float32) + b
        if i < 3:
            h = jnp.maximum(h, 0.0)
    return h


if __name__ == "__main__":
    key = jax.random.PRNGKey(0)
    key, kx = jax.random.split(key)

    # Small MNIST-shaped batch: (B, C, H, W) = (2, 1, 28, 28)
    x = jax.random.normal(kx, (2, 1, 28, 28), jnp.float32)
    params = init_params(key)

    logits = mlp_forward(x, params)
    logits = jax.block_until_ready(logits)

    ref = mlp_reference(x, params)
    assert logits.shape == (2, 10)
    # Kernel output is rounded through bf16 on the final store -> loose tol.
    assert jnp.allclose(logits, ref, atol=2e-2, rtol=2e-2)

    print("KERNEL_OK")
</pallas_src>

<mosaic_0001>
module attributes {stable_mosaic.version = 11 : i64} {
  func.func @_mlp_kernel(%arg0: i32, %arg1: memref<16x784xbf16, #tpu.memory_space<vmem>>, %arg2: memref<784x512xbf16, #tpu.memory_space<vmem>>, %arg3: memref<1x512xf32, #tpu.memory_space<vmem>>, %arg4: memref<512x256xbf16, #tpu.memory_space<vmem>>, %arg5: memref<1x256xf32, #tpu.memory_space<vmem>>, %arg6: memref<256x128xbf16, #tpu.memory_space<vmem>>, %arg7: memref<1x128xf32, #tpu.memory_space<vmem>>, %arg8: memref<128x128xbf16, #tpu.memory_space<vmem>>, %arg9: memref<1x128xf32, #tpu.memory_space<vmem>>, %arg10: memref<16x128xbf16, #tpu.memory_space<vmem>>) attributes {dimension_semantics = [#tpu.dimension_semantics<parallel>], iteration_bounds = array<i64: 1>, scalar_prefetch = 0 : i64, scratch_operands = 0 : i64, tpu.core_type = #tpu.core_type<tc>, window_params = [{transform_indices = @transform_0, window_bounds = array<i64: 16, 784>}, {pipeline_mode = #tpu.pipeline_mode<synchronous>, transform_indices = @transform_1, window_bounds = array<i64: 784, 512>}, {pipeline_mode = #tpu.pipeline_mode<synchronous>, transform_indices = @transform_2, window_bounds = array<i64: 1, 512>}, {pipeline_mode = #tpu.pipeline_mode<synchronous>, transform_indices = @transform_3, window_bounds = array<i64: 512, 256>}, {pipeline_mode = #tpu.pipeline_mode<synchronous>, transform_indices = @transform_4, window_bounds = array<i64: 1, 256>}, {pipeline_mode = #tpu.pipeline_mode<synchronous>, transform_indices = @transform_5, window_bounds = array<i64: 256, 128>}, {pipeline_mode = #tpu.pipeline_mode<synchronous>, transform_indices = @transform_6, window_bounds = array<i64: 1, 128>}, {pipeline_mode = #tpu.pipeline_mode<synchronous>, transform_indices = @transform_7, window_bounds = array<i64: 128, 128>}, {pipeline_mode = #tpu.pipeline_mode<synchronous>, transform_indices = @transform_8, window_bounds = array<i64: 1, 128>}, {transform_indices = @transform_9, window_bounds = array<i64: 16, 128>}]} {
    %c0 = arith.constant 0 : index
    %c0_0 = arith.constant 0 : index
    %0 = vector.load %arg1[%c0, %c0_0] : memref<16x784xbf16, #tpu.memory_space<vmem>>, vector<16x784xbf16>
    %c0_1 = arith.constant 0 : index
    %c0_2 = arith.constant 0 : index
    %1 = vector.load %arg2[%c0_1, %c0_2] : memref<784x512xbf16, #tpu.memory_space<vmem>>, vector<784x512xbf16>
    %cst = arith.constant dense<0.000000e+00> : vector<16x512xf32>
    %2 = tpu.matmul %0, %1, %cst {dimension_numbers = #tpu.dot_dimension_numbers<[1], [0], [0], [1], [0, 0, 1, 1], [], []>} : vector<16x784xbf16>, vector<784x512xbf16>, vector<16x512xf32> -> vector<16x512xf32>
    %c0_3 = arith.constant 0 : index
    %c0_4 = arith.constant 0 : index
    %3 = vector.load %arg3[%c0_3, %c0_4] : memref<1x512xf32, #tpu.memory_space<vmem>>, vector<1x512xf32>
    %4 = vector.broadcast %3 : vector<1x512xf32> to vector<16x512xf32>
    %5 = arith.addf %2, %4 : vector<16x512xf32>
    %cst_5 = arith.constant 0.000000e+00 : f32
    %6 = vector.broadcast %cst_5 : f32 to vector<16x512xf32>
    %7 = arith.maximumf %5, %6 : vector<16x512xf32>
    %8 = arith.truncf %7 : vector<16x512xf32> to vector<16x512xbf16>
    %c0_6 = arith.constant 0 : index
    %c0_7 = arith.constant 0 : index
    %9 = vector.load %arg4[%c0_6, %c0_7] : memref<512x256xbf16, #tpu.memory_space<vmem>>, vector<512x256xbf16>
    %cst_8 = arith.constant dense<0.000000e+00> : vector<16x256xf32>
    %10 = tpu.matmul %8, %9, %cst_8 {dimension_numbers = #tpu.dot_dimension_numbers<[1], [0], [0], [1], [0, 0, 1, 1], [], []>} : vector<16x512xbf16>, vector<512x256xbf16>, vector<16x256xf32> -> vector<16x256xf32>
    %c0_9 = arith.constant 0 : index
    %c0_10 = arith.constant 0 : index
    %11 = vector.load %arg5[%c0_9, %c0_10] : memref<1x256xf32, #tpu.memory_space<vmem>>, vector<1x256xf32>
    %12 = vector.broadcast %11 : vector<1x256xf32> to vector<16x256xf32>
    %13 = arith.addf %10, %12 : vector<16x256xf32>
    %cst_11 = arith.constant 0.000000e+00 : f32
    %14 = vector.broadcast %cst_11 : f32 to vector<16x256xf32>
    %15 = arith.maximumf %13, %14 : vector<16x256xf32>
    %16 = arith.truncf %15 : vector<16x256xf32> to vector<16x256xbf16>
    %c0_12 = arith.constant 0 : index
    %c0_13 = arith.constant 0 : index
    %17 = vector.load %arg6[%c0_12, %c0_13] : memref<256x128xbf16, #tpu.memory_space<vmem>>, vector<256x128xbf16>
    %cst_14 = arith.constant dense<0.000000e+00> : vector<16x128xf32>
    %18 = tpu.matmul %16, %17, %cst_14 {dimension_numbers = #tpu.dot_dimension_numbers<[1], [0], [0], [1], [0, 0, 1, 1], [], []>} : vector<16x256xbf16>, vector<256x128xbf16>, vector<16x128xf32> -> vector<16x128xf32>
    %c0_15 = arith.constant 0 : index
    %c0_16 = arith.constant 0 : index
    %19 = vector.load %arg7[%c0_15, %c0_16] : memref<1x128xf32, #tpu.memory_space<vmem>>, vector<1x128xf32>
    %20 = vector.broadcast %19 : vector<1x128xf32> to vector<16x128xf32>
    %21 = arith.addf %18, %20 : vector<16x128xf32>
    %cst_17 = arith.constant 0.000000e+00 : f32
    %22 = vector.broadcast %cst_17 : f32 to vector<16x128xf32>
    %23 = arith.maximumf %21, %22 : vector<16x128xf32>
    %24 = arith.truncf %23 : vector<16x128xf32> to vector<16x128xbf16>
    %c0_18 = arith.constant 0 : index
    %c0_19 = arith.constant 0 : index
    %25 = vector.load %arg8[%c0_18, %c0_19] : memref<128x128xbf16, #tpu.memory_space<vmem>>, vector<128x128xbf16>
    %cst_20 = arith.constant dense<0.000000e+00> : vector<16x128xf32>
    %26 = tpu.matmul %24, %25, %cst_20 {dimension_numbers = #tpu.dot_dimension_numbers<[1], [0], [0], [1], [0, 0, 1, 1], [], []>} : vector<16x128xbf16>, vector<128x128xbf16>, vector<16x128xf32> -> vector<16x128xf32>
    %c0_21 = arith.constant 0 : index
    %c0_22 = arith.constant 0 : index
    %27 = vector.load %arg9[%c0_21, %c0_22] : memref<1x128xf32, #tpu.memory_space<vmem>>, vector<1x128xf32>
    %28 = vector.broadcast %27 : vector<1x128xf32> to vector<16x128xf32>
    %29 = arith.addf %26, %28 : vector<16x128xf32>
    %30 = arith.truncf %29 : vector<16x128xf32> to vector<16x128xbf16>
    %c0_23 = arith.constant 0 : index
    %c0_24 = arith.constant 0 : index
    %31 = vector.load %arg10[%c0_23, %c0_24] : memref<16x128xbf16, #tpu.memory_space<vmem>>, vector<16x128xbf16>
    tpu.vector_store %arg10[%c0_23, %c0_24], %30 {strides = array<i32>} : memref<16x128xbf16, #tpu.memory_space<vmem>>, vector<16x128xbf16>,
    return
  }
  func.func @transform_0(%arg0: i32) -> (i32, i32) {
    %c0_i32 = arith.constant 0 : i32
    %c0_i32_0 = arith.constant 0 : i32
    return %arg0, %c0_i32 : i32, i32
  }
  func.func @transform_1(%arg0: i32) -> (i32, i32) {
    %c0_i32 = arith.constant 0 : i32
    %c0_i32_0 = arith.constant 0 : i32
    %c0_i32_1 = arith.constant 0 : i32
    return %c0_i32, %c0_i32_0 : i32, i32
  }
  func.func @transform_2(%arg0: i32) -> (i32, i32) {
    %c0_i32 = arith.constant 0 : i32
    %c0_i32_0 = arith.constant 0 : i32
    %c0_i32_1 = arith.constant 0 : i32
    return %c0_i32, %c0_i32_0 : i32, i32
  }
  func.func @transform_3(%arg0: i32) -> (i32, i32) {
    %c0_i32 = arith.constant 0 : i32
    %c0_i32_0 = arith.constant 0 : i32
    %c0_i32_1 = arith.constant 0 : i32
    return %c0_i32, %c0_i32_0 : i32, i32
  }
  func.func @transform_4(%arg0: i32) -> (i32, i32) {
    %c0_i32 = arith.constant 0 : i32
    %c0_i32_0 = arith.constant 0 : i32
    %c0_i32_1 = arith.constant 0 : i32
    return %c0_i32, %c0_i32_0 : i32, i32
  }
  func.func @transform_5(%arg0: i32) -> (i32, i32) {
    %c0_i32 = arith.constant 0 : i32
    %c0_i32_0 = arith.constant 0 : i32
    %c0_i32_1 = arith.constant 0 : i32
    return %c0_i32, %c0_i32_0 : i32, i32
  }
  func.func @transform_6(%arg0: i32) -> (i32, i32) {
    %c0_i32 = arith.constant 0 : i32
    %c0_i32_0 = arith.constant 0 : i32
    %c0_i32_1 = arith.constant 0 : i32
    return %c0_i32, %c0_i32_0 : i32, i32
  }
  func.func @transform_7(%arg0: i32) -> (i32, i32) {
    %c0_i32 = arith.constant 0 : i32
    %c0_i32_0 = arith.constant 0 : i32
    %c0_i32_1 = arith.constant 0 : i32
    return %c0_i32, %c0_i32_0 : i32, i32
  }
  func.func @transform_8(%arg0: i32) -> (i32, i32) {
    %c0_i32 = arith.constant 0 : i32
    %c0_i32_0 = arith.constant 0 : i32
    %c0_i32_1 = arith.constant 0 : i32
    return %c0_i32, %c0_i32_0 : i32, i32
  }
  func.func @transform_9(%arg0: i32) -> (i32, i32) {
    %c0_i32 = arith.constant 0 : i32
    %c0_i32_0 = arith.constant 0 : i32
    return %arg0, %c0_i32 : i32, i32
  }
}

</mosaic_0001>

<bundles_post_ra>
// kernel: tpu_custom_call.1
= control target key start
LH: loop header
LB: loop body
LE: loop exit
PB: predicated region body
PF: predicated region fallthrough
CT: control target
= control target key end

     0   :  { %14 = vsyncpa [#allocation3], 0  ;;  %s3624_s0 = inlined_call_operand.hbm [shape: bf16[16,784], index: 0, kind: input, shape index: {}]   ;;  %s3625_s1 = inlined_call_operand.hbm [shape: bf16[784,512], index: 1, kind: input, shape index: {}]   ;;  %s3626_s2 = inlined_call_operand.hbm [shape: f32[1,512], index: 2, kind: input, shape index: {}]   ;;  %s3627_s3 = inlined_call_operand.hbm [shape: bf16[512,256], index: 3, kind: input, shape index: {}]   ;;  %s3628_s4 = inlined_call_operand.vmem [shape: f32[1,256], index: 4, kind: input, shape index: {}]   ;;  %s3629_s5 = inlined_call_operand.hbm [shape: bf16[256,128], index: 5, kind: input, shape index: {}]   ;;  %s3630_s6 = inlined_call_operand.vmem [shape: f32[1,128], index: 6, kind: input, shape index: {}]   ;;  %s3631_s7 = inlined_call_operand.hbm [shape: bf16[128,128], index: 7, kind: input, shape index: {}]   ;;  %s3632_s8 = inlined_call_operand.vmem [shape: f32[1,128], index: 8, kind: input, shape index: {}]   ;;  %s3633_s9 = inlined_call_operand.hbm [shape: bf16[16,128], index: 9, kind: output, shape index: {}]  }
   0x1   :  { %15 = vsyncpa [#allocation6], 0 }
   0x2   :  { %16 = vsyncpa [#allocation9], 0 }
   0x3   :  { %17 = vsyncpa [#allocation12], 0 }
   0x4   :  { %18 = vsyncpa [#allocation4], 0  ;;  %s3471_s30 = smov [#allocation5]  }
   0x5   :  { %s36_s10 = sshll.u32 %s3471_s30, 4  ;;  %s37_s10 = int_to_ptr.vmem [resolvable:$true] %s36_s10 }
   0x6   :  { %s3329_s11 = scalar_lea.vmem %s37_s10, 25088  ;;  %p3334_p1 = scmp.lt.s32.totalorder %s37_s10, %s37_s10 }
   0x7   :  { %p3330_p0 = scmp.ne.s32.totalorder %s37_s10, %s3329_s11  ;;  %p3335_p2 = scmp.lt.s32.totalorder %s3329_s11, %s3329_s11 }
   0x9   :  { %p3336_p3 = por %p3335_p2, %p3334_p1 }
   0xb   :  { %p3337_p4 = pnand %p3336_p3, %p3330_p0 }
   0xd   :  { %3340 = shalt.err (!%p3337_p4)
}
   0xe   :  { %s3472_s12 = smov 256   ;;  %s3473_s13 = smov 16  }
   0xf   :  { %42 = dma.hbm_to_vmem [thread:$0]  %s3625_s1, 25088, %s37_s10, [#allocation6], %s3472_s12, %s3472_s12, %s3473_s13  }
  0x10   :  { %s3474_s16 = smov [#allocation8]  }
  0x11   :  { %s58_s17 = sshll.u32 %s3474_s16, 4  ;;  %s59_s17 = int_to_ptr.vmem [resolvable:$true] %s58_s17 }
  0x12   :  { %s3349_s18 = scalar_lea.vmem %s59_s17, 8192  ;;  %p3354_p6 = scmp.lt.s32.totalorder %s59_s17, %s59_s17 }
  0x13   :  { %p3350_p5 = scmp.ne.s32.totalorder %s59_s17, %s3349_s18  ;;  %p3355_p7 = scmp.lt.s32.totalorder %s3349_s18, %s3349_s18 }
  0x15   :  { %p3356_p8 = por %p3355_p7, %p3354_p6 }
  0x17   :  { %p3357_p9 = pnand %p3356_p8, %p3350_p5 }
  0x19   :  { %3360 = shalt.err (!%p3357_p9)
}
  0x1a   :  { %s3475_s19 = smov 128   ;;  %s3476_s20 = smov 8  }
  0x1b   :  { %64 = dma.hbm_to_vmem [thread:$0]  %s3627_s3, 8192, %s59_s17, [#allocation9], %s3475_s19, %s3475_s19, %s3476_s20  }
  0x1c   :  { %s3477_s23 = smov [#allocation2]  }
  0x1d   :  { %s24_s24 = sshll.u32 %s3477_s23, 4  ;;  %s25_s24 = int_to_ptr.vmem [resolvable:$true] %s24_s24 }
  0x1e   :  { %s3369_s1 = scalar_lea.vmem %s25_s24, 896  ;;  %p3374_p11 = scmp.lt.s32.totalorder %s25_s24, %s25_s24 }
  0x1f   :  { %p3370_p10 = scmp.ne.s32.totalorder %s25_s24, %s3369_s1  ;;  %p3375_p12 = scmp.lt.s32.totalorder %s3369_s1, %s3369_s1 }
  0x21   :  { %p3376_p13 = por %p3375_p12, %p3374_p11 }
  0x23   :  { %p3377_p0 = pnand %p3376_p13, %p3370_p10 }
  0x25   :  { %3380 = shalt.err (!%p3377_p0)
}
  0x26   :  { %s3478_s25 = smov 448   ;;  %s3479_s26 = smov 28  }
  0x27   :  { %30 = dma.hbm_to_vmem [thread:$0]  %s3624_s0, 896, %s25_s24, [#allocation3], %s3478_s25, %s3478_s25, %s3479_s26  }
  0x28   :  { %s3480_s29 = smov [#allocation7]   ;;  %s3481_s3 = smov [#allocation10]  }
  0x29   :  { %s49_s30 = sshll.u32 %s3480_s29, 4  ;;  %s72_s10 = sshll.u32 %s3481_s3, 4  ;;  %s50_s30 = int_to_ptr.vmem [resolvable:$true] %s49_s30  ;;  %s73_s10 = int_to_ptr.vmem [resolvable:$true] %s72_s10 }
  0x2a   :  { %s3389_s11 = scalar_lea.vmem %s50_s30, 64  ;;  %p3394_p2 = scmp.lt.s32.totalorder %s50_s30, %s50_s30 }
  0x2b   :  { %p3390_p1 = scmp.ne.s32.totalorder %s50_s30, %s3389_s11  ;;  %p3395_p3 = scmp.lt.s32.totalorder %s3389_s11, %s3389_s11 }
  0x2d   :  { %p3396_p4 = por %p3395_p3, %p3394_p2 }
  0x2f   :  { %p3397_p5 = pnand %p3396_p4, %p3390_p1 }
  0x31   :  { %3400 = shalt.err (!%p3397_p5)
}
  0x32   :  { %52 = dma.hbm_to_vmem [thread:$0]  %s3626_s2, 64, %s50_s30, [#allocation6]  }
  0x33   :  { %s3409_s14 = scalar_lea.vmem %s73_s10, 2048  ;;  %p3414_p7 = scmp.lt.s32.totalorder %s73_s10, %s73_s10 }
  0x34   :  { %p3410_p6 = scmp.ne.s32.totalorder %s73_s10, %s3409_s14  ;;  %p3415_p8 = scmp.lt.s32.totalorder %s3409_s14, %s3409_s14 }
  0x36   :  { %p3416_p9 = por %p3415_p8, %p3414_p7 }
  0x38   :  { %p3417_p10 = pnand %p3416_p9, %p3410_p6 }
  0x3a   :  { %3420 = shalt.err (!%p3417_p10)
}
  0x3b   :  { %s3482_s0 = smov 64   ;;  %s3483_s15 = smov 4  }
  0x3c   :  { %78 = dma.hbm_to_vmem [thread:$0]  %s3629_s5, 2048, %s73_s10, [#allocation9], %s3482_s0, %s3482_s0, %s3483_s15  }
  0x3d   :  { %s3484_s18 = smov [#allocation11]  }
  0x3e   :  { %s86_s19 = sshll.u32 %s3484_s18, 4  ;;  %s87_s19 = int_to_ptr.vmem [resolvable:$true] %s86_s19 }
  0x3f   :  { %s3429_s2 = scalar_lea.vmem %s87_s19, 1024  ;;  %p3434_p12 = scmp.lt.s32.totalorder %s87_s19, %s87_s19 }
  0x40   :  { %p3430_p11 = scmp.ne.s32.totalorder %s87_s19, %s3429_s2  ;;  %p3435_p13 = scmp.lt.s32.totalorder %s3429_s2, %s3429_s2 }
  0x42   :  { %p3436_p0 = por %p3435_p13, %p3434_p12 }
  0x44   :  { %p3437_p1 = pnand %p3436_p0, %p3430_p11 }
  0x46   :  { %3440 = shalt.err (!%p3437_p1)
}
  0x47   :  { %92 = dma.hbm_to_vmem [thread:$0]  %s3631_s7, 1024, %s87_s19, [#allocation12], %s3482_s0, %s3482_s0, %s3483_s15  }
  0x48   :  { %3461 = dma.done.wait [#allocation3], 896  }
  0x49   :  { %3462 = vsyncadd [#allocation3], 4294966400 }
  0x4a   :  { %3463 = dma.done.wait [#allocation6], 25152  }
  0x4b   :  { %3464 = vsyncadd [#allocation6], 4294942144 }
  0x4c   :  { %3465 = dma.done.wait [#allocation9], 10240  }
  0x4d   :  { %3466 = vsyncadd [#allocation9], 4294957056 }
  0x4e   :  { %3467 = dma.done.wait [#allocation12], 1024  }
  0x4f   :  { %3468 = vsyncadd [#allocation12], 4294966272  ;;  %v2897_v0 = vld [vmem:[#allocation5 + $0xe4] ss:$16 sps:$4 sm:$0xff]   ;;  %v2901_v2 = vld [vmem:[#allocation5 + $0xe0] ss:$16 sps:$4 sm:$0xff]  }
  0x50   :  { %v2899_v1 = vld [vmem:[#allocation5 + $0x2e4] ss:$16 sps:$4 sm:$0xff]   ;;  %1359 = vmatprep.subr.bf16.mxu0 %v2897_v0  ;;  %v2902_v3 = vld [vmem:[#allocation5 + $0x2e0] ss:$16 sps:$4 sm:$0xff]   ;;  %v3563_v49 = vld [vmem:[#allocation2 + $0x4] ss:$28 sps:$4 sm:$0xff]  }
  0x51   :  { %1402 = vmatprep.subr.bf16.mxu1 %v2899_v1  ;;  %v2903_v4 = vld [vmem:[#allocation5 + $0xc4] ss:$16 sps:$4 sm:$0xff]   ;;  %1360 = vmatpush1.bf16.msra.mxu0 %v2901_v2  ;;  %v2907_v6 = vld [vmem:[#allocation5 + $0xc0] ss:$16 sps:$4 sm:$0xff]   ;;  %vm1355_vm0 = vcmask 130048   ;;  %vm3487_vm1 = vmmov 0  }
  0x52   :  { %1403 = vmatpush1.bf16.msra.mxu1 %v2902_v3  ;;  %v2905_v5 = vld [vmem:[#allocation5 + $0x2c4] ss:$16 sps:$4 sm:$0xff]   ;;  %1361 = vmatprep.subr.bf16.mxu0 %v2903_v4  ;;  %v2908_v7 = vld [vmem:[#allocation5 + $0x2c0] ss:$16 sps:$4 sm:$0xff]   ;;  %s3488_s1 = smov [#allocation13]  }
  0x53   :  { %1404 = vmatprep.subr.bf16.mxu1 %v2905_v5  ;;  %v2909_v8 = vld [vmem:[#allocation5 + $0xa4] ss:$16 sps:$4 sm:$0xff]   ;;  %v2913_v10 = vld [vmem:[#allocation5 + $0xa0] ss:$16 sps:$4 sm:$0xff]   ;;  %1391 = vmatprep.mubr.bf16.mxu0 %v3563_v49  ;;  %s2509_s25 = sshll.u32 %s3488_s1, 4  ;;  %s2510_s25 = int_to_ptr.vmem [resolvable:$true] %s2509_s25 }
  0x54   :  { %v2911_v9 = vld [vmem:[#allocation5 + $0x2a4] ss:$16 sps:$4 sm:$0xff]   ;;  %v2914_v11 = vld [vmem:[#allocation5 + $0x2a0] ss:$16 sps:$4 sm:$0xff]   ;;  %p3446_p3 = scmp.lt.s32.totalorder %s2510_s25, %s2510_s25 }
  0x55   :  { %1362 = vmatpush1.bf16.msra.mxu0 %v2907_v6  ;;  %v2915_v12 = vld [vmem:[#allocation5 + $0x84] ss:$16 sps:$4 sm:$0xff]   ;;  %v2919_v14 = vld [vmem:[#allocation5 + $0x80] ss:$16 sps:$4 sm:$0xff]  }
  0x56   :  { %1405 = vmatpush1.bf16.msra.mxu1 %v2908_v7  ;;  %1363 = vmatprep.subr.bf16.mxu0 %v2909_v8  ;;  %v2917_v13 = vld [vmem:[#allocation5 + $0x284] ss:$16 sps:$4 sm:$0xff]   ;;  %v2920_v15 = vld [vmem:[#allocation5 + $0x280] ss:$16 sps:$4 sm:$0xff]  }
  0x57   :  { %1406 = vmatprep.subr.bf16.mxu1 %v2911_v9  ;;  %v2921_v16 = vld [vmem:[#allocation5 + $0x64] ss:$16 sps:$4 sm:$0xff]   ;;  %v2925_v18 = vld [vmem:[#allocation5 + $0x60] ss:$16 sps:$4 sm:$0xff]   ;;  %v3010_v9 = vld [vmem:[#allocation5 + $0xec] ss:$16 sps:$4 sm:$0xff]  }
  0x58   :  { %v2923_v17 = vld [vmem:[#allocation5 + $0x264] ss:$16 sps:$4 sm:$0xff]   ;;  %v2926_v19 = vld [vmem:[#allocation5 + $0x260] ss:$16 sps:$4 sm:$0xff]  }
  0x59   :  { %1364 = vmatpush1.bf16.msra.mxu0 %v2913_v10  ;;  %v2927_v20 = vld [vmem:[#allocation5 + $0x44] ss:$16 sps:$4 sm:$0xff]   ;;  %v2931_v22 = vld [vmem:[#allocation5 + $0x40] ss:$16 sps:$4 sm:$0xff]  }
  0x5a   :  { %1407 = vmatpush1.bf16.msra.mxu1 %v2914_v11  ;;  %1365 = vmatprep.subr.bf16.mxu0 %v2915_v12  ;;  %v2929_v21 = vld [vmem:[#allocation5 + $0x244] ss:$16 sps:$4 sm:$0xff]   ;;  %v2932_v23 = vld [vmem:[#allocation5 + $0x240] ss:$16 sps:$4 sm:$0xff]   ;;  %v3485_v11 = vmov 0  }
  0x5b   :  { %1408 = vmatprep.subr.bf16.mxu1 %v2917_v13  ;;  %v2933_v24 = vld [vmem:[#allocation5 + $0x24] ss:$16 sps:$4 sm:$0xff]   ;;  %v2937_v26 = vld [vmem:[#allocation5 + $0x20] ss:$16 sps:$4 sm:$0xff]   ;;  %v3008_v13 = vld [vmem:[#allocation5 + $0xe8] ss:$16 sps:$4 sm:$0xff]  }
  0x5c   :  { %v2935_v25 = vld [vmem:[#allocation5 + $0x224] ss:$16 sps:$4 sm:$0xff]   ;;  %v2938_v27 = vld [vmem:[#allocation5 + $0x220] ss:$16 sps:$4 sm:$0xff]  }
  0x5d   :  { %1366 = vmatpush1.bf16.msra.mxu0 %v2919_v14  ;;  %v2939_v28 = vld [vmem:[#allocation5 + $0x4] ss:$16 sps:$4 sm:$0xff]   ;;  %v2943_v30 = vld [vmem:[#allocation5] ss:$16 sps:$4 sm:$0xff]  }
  0x5e   :  { %1409 = vmatpush1.bf16.msra.mxu1 %v2920_v15  ;;  %1367 = vmatprep.subr.bf16.mxu0 %v2921_v16  ;;  %v2941_v29 = vld [vmem:[#allocation5 + $0x204] ss:$16 sps:$4 sm:$0xff]   ;;  %v2944_v31 = vld [vmem:[#allocation5 + $0x200] ss:$16 sps:$4 sm:$0xff]   ;;  %v3017_v16 = vld [vmem:[#allocation5 + $0xcc] ss:$16 sps:$4 sm:$0xff]  }
  0x5f   :  { %1410 = vmatprep.subr.bf16.mxu1 %v2923_v17  ;;  %v2945_v32 = vld [vmem:[#allocation5 + $0x1e4] ss:$16 sps:$4 sm:$0xff]   ;;  %v2949_v34 = vld [vmem:[#allocation5 + $0x1e0] ss:$16 sps:$4 sm:$0xff]  }
  0x60   :  { %v2947_v33 = vld [vmem:[#allocation5 + $0x3e4] ss:$16 sps:$4 sm:$0xff]   ;;  %v2950_v35 = vld [vmem:[#allocation5 + $0x3e0] ss:$16 sps:$4 sm:$0xff]  }
  0x61   :  { %1368 = vmatpush1.bf16.msra.mxu0 %v2925_v18  ;;  %v2951_v36 = vld [vmem:[#allocation5 + $0x1c4] ss:$16 sps:$4 sm:$0xff]   ;;  %v2955_v38 = vld [vmem:[#allocation5 + $0x1c0] ss:$16 sps:$4 sm:$0xff]   ;;  %v3015_v18 = vld [vmem:[#allocation5 + $0xc8] ss:$16 sps:$4 sm:$0xff]  }
  0x62   :  { %1411 = vmatpush1.bf16.msra.mxu1 %v2926_v19  ;;  %1369 = vmatprep.subr.bf16.mxu0 %v2927_v20  ;;  %v2953_v37 = vld [vmem:[#allocation5 + $0x3c4] ss:$16 sps:$4 sm:$0xff]   ;;  %v2956_v39 = vld [vmem:[#allocation5 + $0x3c0] ss:$16 sps:$4 sm:$0xff]   ;;  %v3023_v20 = vld [vmem:[#allocation5 + $0xac] ss:$16 sps:$4 sm:$0xff]  }
  0x63   :  { %1412 = vmatprep.subr.bf16.mxu1 %v2929_v21  ;;  %v2957_v40 = vld [vmem:[#allocation5 + $0x1a4] ss:$16 sps:$4 sm:$0xff]   ;;  %v2961_v42 = vld [vmem:[#allocation5 + $0x1a0] ss:$16 sps:$4 sm:$0xff]  }
  0x64   :  { %v2959_v41 = vld [vmem:[#allocation5 + $0x3a4] ss:$16 sps:$4 sm:$0xff]   ;;  %v2962_v43 = vld [vmem:[#allocation5 + $0x3a0] ss:$16 sps:$4 sm:$0xff]  }
  0x65   :  { %1370 = vmatpush1.bf16.msra.mxu0 %v2931_v22  ;;  %v2963_v44 = vld [vmem:[#allocation5 + $0x184] ss:$16 sps:$4 sm:$0xff]   ;;  %v2967_v46 = vld [vmem:[#allocation5 + $0x180] ss:$16 sps:$4 sm:$0xff]   ;;  %v3021_v22 = vld [vmem:[#allocation5 + $0xa8] ss:$16 sps:$4 sm:$0xff]  }
  0x66   :  { %1413 = vmatpush1.bf16.msra.mxu1 %v2932_v23  ;;  %1371 = vmatprep.subr.bf16.mxu0 %v2933_v24  ;;  %v2965_v45 = vld [vmem:[#allocation5 + $0x384] ss:$16 sps:$4 sm:$0xff]   ;;  %v2968_v47 = vld [vmem:[#allocation5 + $0x380] ss:$16 sps:$4 sm:$0xff]   ;;  %v3029_v24 = vld [vmem:[#allocation5 + $0x8c] ss:$16 sps:$4 sm:$0xff]  }
  0x67   :  { %1414 = vmatprep.subr.bf16.mxu1 %v2935_v25  ;;  %v2969_v48 = vld [vmem:[#allocation5 + $0x164] ss:$16 sps:$4 sm:$0xff]   ;;  %v2973_v52 = vld [vmem:[#allocation5 + $0x160] ss:$16 sps:$4 sm:$0xff]  }
  0x68   :  { %v2971_v50 = vld [vmem:[#allocation5 + $0x364] ss:$16 sps:$4 sm:$0xff]   ;;  %v2974_v53 = vld [vmem:[#allocation5 + $0x360] ss:$16 sps:$4 sm:$0xff]  }
  0x69   :  { %1372 = vmatpush1.bf16.msra.mxu0 %v2937_v26  ;;  %v3565_v51 = vld [vmem:[#allocation2 + $0xc] ss:$28 sps:$4 sm:$0xff]   ;;  %v3569_v4 = vld [vmem:[#allocation2] ss:$28 sps:$4 sm:$0xff]   ;;  %v3576_v14 = vld [vmem:[#allocation2 + $0x18] ss:$28 sps:$4 sm:$0xff]  }
  0x6a   :  { %1415 = vmatpush1.bf16.msra.mxu1 %v2938_v27  ;;  %1373 = vmatprep.subr.bf16.mxu0 %v2939_v28  ;;  %v2975_v54 = vld [vmem:[#allocation5 + $0x144] ss:$16 sps:$4 sm:$0xff]   ;;  %v2979_v56 = vld [vmem:[#allocation5 + $0x140] ss:$16 sps:$4 sm:$0xff]   ;;  %v3027_v26 = vld [vmem:[#allocation5 + $0x88] ss:$16 sps:$4 sm:$0xff]  }
  0x6b   :  { %1416 = vmatprep.subr.bf16.mxu1 %v2941_v29  ;;  %1434 = vmatprep.mubr.bf16.mxu1 %v3565_v51  ;;  %v2977_v55 = vld [vmem:[#allocation5 + $0x344] ss:$16 sps:$4 sm:$0xff]   ;;  %v2980_v57 = vld [vmem:[#allocation5 + $0x340] ss:$16 sps:$4 sm:$0xff]   ;;  %v3035_v28 = vld [vmem:[#allocation5 + $0x6c] ss:$16 sps:$4 sm:$0xff]  }
  0x6c   :  { %v2981_v58 = vld [vmem:[#allocation5 + $0x124] ss:$16 sps:$4 sm:$0xff]   ;;  %v2985_v60 = vld [vmem:[#allocation5 + $0x120] ss:$16 sps:$4 sm:$0xff]  }
  0x6d   :  { %1374 = vmatpush1.bf16.msra.mxu0 %v2943_v30  ;;  %v2983_v59 = vld [vmem:[#allocation5 + $0x324] ss:$16 sps:$4 sm:$0xff]   ;;  %v2986_v61 = vld [vmem:[#allocation5 + $0x320] ss:$16 sps:$4 sm:$0xff]   ;;  %v3033_v30 = vld [vmem:[#allocation5 + $0x68] ss:$16 sps:$4 sm:$0xff]  }
  0x6e   :  { %1417 = vmatpush1.bf16.msra.mxu1 %v2944_v31  ;;  %1375 = vmatprep.subr.bf16.mxu0 %v2945_v32  ;;  %v2987_v62 = vld [vmem:[#allocation5 + $0x104] ss:$16 sps:$4 sm:$0xff]   ;;  %v2991_v0 = vld [vmem:[#allocation5 + $0x100] ss:$16 sps:$4 sm:$0xff]   ;;  %v3041_v32 = vld [vmem:[#allocation5 + $0x4c] ss:$16 sps:$4 sm:$0xff]  }
  0x6f   :  { %1418 = vmatprep.subr.bf16.mxu1 %v2947_v33  ;;  %v2989_v63 = vld [vmem:[#allocation5 + $0x304] ss:$16 sps:$4 sm:$0xff]   ;;  %v2992_v1 = vld [vmem:[#allocation5 + $0x300] ss:$16 sps:$4 sm:$0xff]   ;;  %v3581_v33 = vld [vmem:[#allocation2 + $0x14] ss:$28 sps:$4 sm:$0xff]  }
  0x70   :  { %v3001_v2 = vld [vmem:[#allocation5 + $0x4e4] ss:$16 sps:$4 sm:$0xff]   ;;  %v3571_v5 = vld [vmem:[#allocation2 + $0x8] ss:$28 sps:$4 sm:$0xff]  }
  0x71   :  { %1376 = vmatpush2.bf16.msra.mxu0 %v2949_v34  ;;  %v3004_v3 = vld [vmem:[#allocation5 + $0x604] ss:$16 sps:$4 sm:$0xff]   ;;  %v2999_v6 = vld [vmem:[#allocation5 + $0x4e0] ss:$16 sps:$4 sm:$0xff]  }
  0x72   :  { %1419 = vmatpush2.bf16.msra.mxu1 %v2950_v35  ;;  %1377 = vmatprep.subr.bf16.mxu0 %v2951_v36  ;;  %v3002_v7 = vld [vmem:[#allocation5 + $0x600] ss:$16 sps:$4 sm:$0xff]   ;;  %v3007_v8 = vld [vmem:[#allocation5 + $0x4c4] ss:$16 sps:$4 sm:$0xff]   ;;  %v3039_v35 = vld [vmem:[#allocation5 + $0x48] ss:$16 sps:$4 sm:$0xff]  }
  0x73   :  { %1420 = vmatprep.subr.bf16.mxu1 %v2953_v37  ;;  %v3005_v10 = vld [vmem:[#allocation5 + $0x4c0] ss:$16 sps:$4 sm:$0xff]   ;;  %v3013_v12 = vld [vmem:[#allocation5 + $0x4a4] ss:$16 sps:$4 sm:$0xff]   ;;  %v3047_v37 = vld [vmem:[#allocation5 + $0x2c] ss:$16 sps:$4 sm:$0xff]  }
  0x74   :  { %v3011_v15 = vld [vmem:[#allocation5 + $0x4a0] ss:$16 sps:$4 sm:$0xff]   ;;  %v3020_v17 = vld [vmem:[#allocation5 + $0x484] ss:$16 sps:$4 sm:$0xff]  }
  0x75   :  { %1378 = vmatpush2.bf16.msra.mxu0 %v2955_v38  ;;  %v3018_v19 = vld [vmem:[#allocation5 + $0x480] ss:$16 sps:$4 sm:$0xff]   ;;  %v3026_v21 = vld [vmem:[#allocation5 + $0x464] ss:$16 sps:$4 sm:$0xff]  }
  0x76   :  { %1421 = vmatpush2.bf16.msra.mxu1 %v2956_v39  ;;  %1379 = vmatprep.subr.bf16.mxu0 %v2957_v40  ;;  %v3024_v23 = vld [vmem:[#allocation5 + $0x460] ss:$16 sps:$4 sm:$0xff]   ;;  %v3032_v25 = vld [vmem:[#allocation5 + $0x444] ss:$16 sps:$4 sm:$0xff]   ;;  %v3045_v39 = vld [vmem:[#allocation5 + $0x28] ss:$16 sps:$4 sm:$0xff]  }
  0x77   :  { %1422 = vmatprep.subr.bf16.mxu1 %v2959_v41  ;;  %v3030_v27 = vld [vmem:[#allocation5 + $0x440] ss:$16 sps:$4 sm:$0xff]   ;;  %v3038_v29 = vld [vmem:[#allocation5 + $0x424] ss:$16 sps:$4 sm:$0xff]   ;;  %v3053_v41 = vld [vmem:[#allocation5 + $0xc] ss:$16 sps:$4 sm:$0xff]  }
  0x78   :  { %v3036_v31 = vld [vmem:[#allocation5 + $0x420] ss:$16 sps:$4 sm:$0xff]   ;;  %v3044_v34 = vld [vmem:[#allocation5 + $0x404] ss:$16 sps:$4 sm:$0xff]  }
  0x79   :  { %1380 = vmatpush2.bf16.msra.mxu0 %v2961_v42  ;;  %v3042_v36 = vld [vmem:[#allocation5 + $0x400] ss:$16 sps:$4 sm:$0xff]   ;;  %v3050_v38 = vld [vmem:[#allocation5 + $0x5e4] ss:$16 sps:$4 sm:$0xff]  }
  0x7a   :  { %1423 = vmatpush2.bf16.msra.mxu1 %v2962_v43  ;;  %1381 = vmatprep.subr.bf16.mxu0 %v2963_v44  ;;  %v3048_v40 = vld [vmem:[#allocation5 + $0x5e0] ss:$16 sps:$4 sm:$0xff]   ;;  %v3056_v42 = vld [vmem:[#allocation5 + $0x5c4] ss:$16 sps:$4 sm:$0xff]   ;;  %v3051_v43 = vld [vmem:[#allocation5 + $0x8] ss:$16 sps:$4 sm:$0xff]  }
  0x7b   :  { %1424 = vmatprep.subr.bf16.mxu1 %v2965_v45  ;;  %v3054_v44 = vld [vmem:[#allocation5 + $0x5c0] ss:$16 sps:$4 sm:$0xff]   ;;  %v3059_v45 = vld [vmem:[#allocation5 + $0x1ec] ss:$16 sps:$4 sm:$0xff]  }
  0x7d   :  { %1382 = vmatpush2.bf16.msra.mxu0 %v2967_v46  ;;  %v3062_v46 = vld [vmem:[#allocation5 + $0x5a4] ss:$16 sps:$4 sm:$0xff]  }
  0x7e   :  { %1425 = vmatpush2.bf16.msra.mxu1 %v2968_v47  ;;  %1383 = vmatprep.subr.bf16.mxu0 %v2969_v48  ;;  %v3057_v47 = vld [vmem:[#allocation5 + $0x1e8] ss:$16 sps:$4 sm:$0xff]   ;;  %v3060_v48 = vld [vmem:[#allocation5 + $0x5a0] ss:$16 sps:$4 sm:$0xff]  }
  0x7f   :  { %1426 = vmatprep.subr.bf16.mxu1 %v2971_v50  ;;  %v3068_v50 = vld [vmem:[#allocation5 + $0x584] ss:$16 sps:$4 sm:$0xff]  }
  0x81   :  { %1384 = vmatpush2.bf16.msra.mxu0 %v2973_v52  ;;  %v3063_v52 = vld [vmem:[#allocation5 + $0x1c8] ss:$16 sps:$4 sm:$0xff]  }
  0x82   :  { %1427 = vmatpush2.bf16.msra.mxu1 %v2974_v53  ;;  %1385 = vmatprep.subr.bf16.mxu0 %v2975_v54  ;;  %v3066_v53 = vld [vmem:[#allocation5 + $0x580] ss:$16 sps:$4 sm:$0xff]   ;;  %v3071_v54 = vld [vmem:[#allocation5 + $0x1ac] ss:$16 sps:$4 sm:$0xff]  }
  0x83   :  { %1428 = vmatprep.subr.bf16.mxu1 %v2977_v55  ;;  %v3074_v55 = vld [vmem:[#allocation5 + $0x564] ss:$16 sps:$4 sm:$0xff]  }
  0x85   :  { %1386 = vmatpush2.bf16.msra.mxu0 %v2979_v56  ;;  %v3069_v56 = vld [vmem:[#allocation5 + $0x1a8] ss:$16 sps:$4 sm:$0xff]  }
  0x86   :  { %1429 = vmatpush2.bf16.msra.mxu1 %v2980_v57  ;;  %1387 = vmatprep.subr.bf16.mxu0 %v2981_v58  ;;  %v3072_v57 = vld [vmem:[#allocation5 + $0x560] ss:$16 sps:$4 sm:$0xff]   ;;  %v3077_v58 = vld [vmem:[#allocation5 + $0x18c] ss:$16 sps:$4 sm:$0xff]  }
  0x87   :  { %1430 = vmatprep.subr.bf16.mxu1 %v2983_v59  ;;  %v3080_v59 = vld [vmem:[#allocation5 + $0x544] ss:$16 sps:$4 sm:$0xff]  }
  0x89   :  { %1388 = vmatpush2.bf16.msra.mxu0 %v2985_v60  ;;  %v3075_v60 = vld [vmem:[#allocation5 + $0x188] ss:$16 sps:$4 sm:$0xff]  }
  0x8a   :  { %1431 = vmatpush2.bf16.msra.mxu1 %v2986_v61  ;;  %1389 = vmatprep.subr.bf16.mxu0 %v2987_v62  ;;  %v3078_v61 = vld [vmem:[#allocation5 + $0x540] ss:$16 sps:$4 sm:$0xff]   ;;  %v3083_v62 = vld [vmem:[#allocation5 + $0x16c] ss:$16 sps:$4 sm:$0xff]  }
  0x8b   :  { %1432 = vmatprep.subr.bf16.mxu1 %v2989_v63  ;;  %v3086_v63 = vld [vmem:[#allocation5 + $0x524] ss:$16 sps:$4 sm:$0xff]  }
  0x8d   :  { %1390 = vmatpush2.bf16.msra.mxu0 %v2991_v0  ;;  %v3081_v0 = vld [vmem:[#allocation5 + $0x168] ss:$16 sps:$4 sm:$0xff]  }
  0x8e   :  { %1433 = vmatpush2.bf16.msra.mxu1 %v2992_v1  ;;  %1445 = vmatprep.subr.bf16.mxu0 %v3001_v2  ;;  %v3084_v1 = vld [vmem:[#allocation5 + $0x520] ss:$16 sps:$4 sm:$0xff]   ;;  %v3089_v2 = vld [vmem:[#allocation5 + $0x14c] ss:$16 sps:$4 sm:$0xff]  }
  0x8f   :  { %1502 = vmatprep.subr.bf16.mxu1 %v3004_v3  ;;  %v3092_v3 = vld [vmem:[#allocation5 + $0x504] ss:$16 sps:$4 sm:$0xff]  }
  0x90   :  { %1392 = vmatmul.mubr.bf16.vlgmr.msra.gmra.mxu0 %v3569_v4 }
  0x91   :  { %1435 = vmatmul.mubr.bf16.vlgmr.msra.gmra.mxu1 %v3571_v5  ;;  %1446 = vmatpush1.bf16.msra.mxu0 %v2999_v6  ;;  %v3087_v6 = vld [vmem:[#allocation5 + $0x148] ss:$16 sps:$4 sm:$0xff]  }
  0x92   :  { %1503 = vmatpush1.bf16.msra.mxu1 %v3002_v7  ;;  %1447 = vmatprep.subr.bf16.mxu0 %v3007_v8  ;;  %v3090_v7 = vld [vmem:[#allocation5 + $0x500] ss:$16 sps:$4 sm:$0xff]   ;;  %v3098_v8 = vld [vmem:[#allocation5 + $0x12c] ss:$16 sps:$4 sm:$0xff]  }
  0x93   :  { %1520 = vmatprep.mubr.bf16.mxu1 %v3485_v11  ;;  %1531 = vmatprep.subr.bf16.mxu1 %v3010_v9  ;;  %v3101_v9 = vld [vmem:[#allocation5 + $0x2ec] ss:$16 sps:$4 sm:$0xff]  }
  0x94   :  { %1477 = vmatprep.mubr.bf16.mxu0 %v3581_v33 }
  0x95   :  { %1448 = vmatpush1.bf16.msra.mxu0 %v3005_v10  ;;  %v3584_v10 = vld [vmem:[#allocation2 + $0x10] ss:$28 sps:$4 sm:$0xff]  }
  0x96   :  { %1449 = vmatprep.subr.bf16.mxu0 %v3013_v12  ;;  %v3096_v12 = vld [vmem:[#allocation5 + $0x128] ss:$16 sps:$4 sm:$0xff]  }
  0x99   :  { %2727 = vmatmul.mubr.msk.bf16.vlgmr.msra.gmra.mxu1 %vm1355_vm0, %v3576_v14  ;;  %1450 = vmatpush1.bf16.msra.mxu0 %v3011_v15  ;;  %v3104_v15 = vld [vmem:[#allocation5 + $0x10c] ss:$16 sps:$4 sm:$0xff]  }
  0x9a   :  { %1532 = vmatpush1.bf16.msra.mxu1 %v3008_v13  ;;  %1451 = vmatprep.subr.bf16.mxu0 %v3020_v17  ;;  %v3099_v13 = vld [vmem:[#allocation5 + $0x2e8] ss:$16 sps:$4 sm:$0xff]  }
  0x9b   :  { %1533 = vmatprep.subr.bf16.mxu1 %v3017_v16  ;;  %1563 = vmatprep.mubr.bf16.mxu1 %v3563_v49  ;;  %v3065_v49 = vld [vmem:[#allocation5 + $0x1cc] ss:$16 sps:$4 sm:$0xff]   ;;  %v3102_v17 = vld [vmem:[#allocation5 + $0x108] ss:$16 sps:$4 sm:$0xff]  }
  0x9c   :  { %v3107_v16 = vld [vmem:[#allocation5 + $0x2cc] ss:$16 sps:$4 sm:$0xff]  }
  0x9d   :  { %1452 = vmatpush1.bf16.msra.mxu0 %v3018_v19  ;;  %v3110_v19 = vld [vmem:[#allocation5 + $0x4ec] ss:$16 sps:$4 sm:$0xff]  }
  0x9e   :  { %1534 = vmatpush1.bf16.msra.mxu1 %v3015_v18  ;;  %1453 = vmatprep.subr.bf16.mxu0 %v3026_v21  ;;  %v3105_v18 = vld [vmem:[#allocation5 + $0x2c8] ss:$16 sps:$4 sm:$0xff]  }
  0x9f   :  { %1535 = vmatprep.subr.bf16.mxu1 %v3023_v20  ;;  %v3113_v20 = vld [vmem:[#allocation5 + $0x2ac] ss:$16 sps:$4 sm:$0xff]   ;;  %v3108_v21 = vld [vmem:[#allocation5 + $0x4e8] ss:$16 sps:$4 sm:$0xff]  }
  0xa1   :  { %1454 = vmatpush1.bf16.msra.mxu0 %v3024_v23  ;;  %v3116_v23 = vld [vmem:[#allocation5 + $0x4cc] ss:$16 sps:$4 sm:$0xff]  }
  0xa2   :  { %1536 = vmatpush1.bf16.msra.mxu1 %v3021_v22  ;;  %1455 = vmatprep.subr.bf16.mxu0 %v3032_v25  ;;  %v3111_v22 = vld [vmem:[#allocation5 + $0x2a8] ss:$16 sps:$4 sm:$0xff]  }
  0xa3   :  { %1537 = vmatprep.subr.bf16.mxu1 %v3029_v24  ;;  %v3119_v24 = vld [vmem:[#allocation5 + $0x28c] ss:$16 sps:$4 sm:$0xff]   ;;  %v3114_v25 = vld [vmem:[#allocation5 + $0x4c8] ss:$16 sps:$4 sm:$0xff]  }
  0xa5   :  { %1456 = vmatpush1.bf16.msra.mxu0 %v3030_v27  ;;  %v3122_v27 = vld [vmem:[#allocation5 + $0x4ac] ss:$16 sps:$4 sm:$0xff]  }
  0xa6   :  { %1538 = vmatpush1.bf16.msra.mxu1 %v3027_v26  ;;  %1457 = vmatprep.subr.bf16.mxu0 %v3038_v29  ;;  %v3117_v26 = vld [vmem:[#allocation5 + $0x288] ss:$16 sps:$4 sm:$0xff]  }
  0xa7   :  { %1539 = vmatprep.subr.bf16.mxu1 %v3035_v28  ;;  %v3125_v28 = vld [vmem:[#allocation5 + $0x26c] ss:$16 sps:$4 sm:$0xff]   ;;  %v3120_v29 = vld [vmem:[#allocation5 + $0x4a8] ss:$16 sps:$4 sm:$0xff]  }
  0xa9   :  { %1458 = vmatpush1.bf16.msra.mxu0 %v3036_v31  ;;  %v3131_v31 = vld [vmem:[#allocation5 + $0x24c] ss:$16 sps:$4 sm:$0xff]  }
  0xaa   :  { %1540 = vmatpush1.bf16.msra.mxu1 %v3033_v30  ;;  %1459 = vmatprep.subr.bf16.mxu0 %v3044_v34  ;;  %v3123_v30 = vld [vmem:[#allocation5 + $0x268] ss:$16 sps:$4 sm:$0xff]   ;;  %v3134_v34 = vld [vmem:[#allocation5 + $0x46c] ss:$16 sps:$4 sm:$0xff]  }
  0xab   :  { %1541 = vmatprep.subr.bf16.mxu1 %v3041_v32  ;;  %v3126_v32 = vld [vmem:[#allocation5 + $0x488] ss:$16 sps:$4 sm:$0xff]  }
  0xad   :  { %1460 = vmatpush1.bf16.msra.mxu0 %v3042_v36  ;;  %v3132_v36 = vld [vmem:[#allocation5 + $0x468] ss:$16 sps:$4 sm:$0xff]  }
  0xae   :  { %1542 = vmatpush1.bf16.msra.mxu1 %v3039_v35  ;;  %1461 = vmatprep.subr.bf16.mxu0 %v3050_v38  ;;  %v3137_v35 = vld [vmem:[#allocation5 + $0x22c] ss:$16 sps:$4 sm:$0xff]  }
  0xaf   :  { %1543 = vmatprep.subr.bf16.mxu1 %v3047_v37  ;;  %v3135_v37 = vld [vmem:[#allocation5 + $0x228] ss:$16 sps:$4 sm:$0xff]   ;;  %v3140_v38 = vld [vmem:[#allocation5 + $0x44c] ss:$16 sps:$4 sm:$0xff]  }
  0xb1   :  { %1462 = vmatpush2.bf16.msra.mxu0 %v3048_v40  ;;  %v3141_v40 = vld [vmem:[#allocation5 + $0x208] ss:$16 sps:$4 sm:$0xff]  }
  0xb2   :  { %1544 = vmatpush1.bf16.msra.mxu1 %v3045_v39  ;;  %1463 = vmatprep.subr.bf16.mxu0 %v3056_v42  ;;  %v3138_v39 = vld [vmem:[#allocation5 + $0x448] ss:$16 sps:$4 sm:$0xff]   ;;  %v3149_v42 = vld [vmem:[#allocation5 + $0x3ec] ss:$16 sps:$4 sm:$0xff]  }
  0xb3   :  { %1545 = vmatprep.subr.bf16.mxu1 %v3053_v41  ;;  %v3146_v41 = vld [vmem:[#allocation5 + $0x42c] ss:$16 sps:$4 sm:$0xff]  }
  0xb5   :  { %1464 = vmatpush2.bf16.msra.mxu0 %v3054_v44  ;;  %v3147_v44 = vld [vmem:[#allocation5 + $0x3e8] ss:$16 sps:$4 sm:$0xff]  }
  0xb6   :  { %1546 = vmatpush1.bf16.msra.mxu1 %v3051_v43  ;;  %1465 = vmatprep.subr.bf16.mxu0 %v3062_v46  ;;  %v3144_v43 = vld [vmem:[#allocation5 + $0x428] ss:$16 sps:$4 sm:$0xff]   ;;  %v3155_v46 = vld [vmem:[#allocation5 + $0x3cc] ss:$16 sps:$4 sm:$0xff]  }
  0xb7   :  { %1547 = vmatprep.subr.bf16.mxu1 %v3059_v45  ;;  %v3152_v45 = vld [vmem:[#allocation5 + $0x40c] ss:$16 sps:$4 sm:$0xff]  }
  0xb9   :  { %1466 = vmatpush2.bf16.msra.mxu0 %v3060_v48  ;;  %v3153_v48 = vld [vmem:[#allocation5 + $0x3c8] ss:$16 sps:$4 sm:$0xff]  }
  0xba   :  { %1548 = vmatpush2.bf16.msra.mxu1 %v3057_v47  ;;  %1467 = vmatprep.subr.bf16.mxu0 %v3068_v50  ;;  %v3150_v47 = vld [vmem:[#allocation5 + $0x408] ss:$16 sps:$4 sm:$0xff]   ;;  %v3161_v50 = vld [vmem:[#allocation5 + $0x3ac] ss:$16 sps:$4 sm:$0xff]  }
  0xbb   :  { %1549 = vmatprep.subr.bf16.mxu1 %v3065_v49  ;;  %v3158_v49 = vld [vmem:[#allocation5 + $0x5ec] ss:$16 sps:$4 sm:$0xff]  }
  0xbd   :  { %1468 = vmatpush2.bf16.msra.mxu0 %v3066_v53  ;;  %v3159_v53 = vld [vmem:[#allocation5 + $0x3a8] ss:$16 sps:$4 sm:$0xff]  }
  0xbe   :  { %1550 = vmatpush2.bf16.msra.mxu1 %v3063_v52  ;;  %1469 = vmatprep.subr.bf16.mxu0 %v3074_v55  ;;  %v3156_v52 = vld [vmem:[#allocation5 + $0x5e8] ss:$16 sps:$4 sm:$0xff]   ;;  %v3167_v55 = vld [vmem:[#allocation5 + $0x38c] ss:$16 sps:$4 sm:$0xff]  }
  0xbf   :  { %1551 = vmatprep.subr.bf16.mxu1 %v3071_v54  ;;  %v3164_v54 = vld [vmem:[#allocation5 + $0x5cc] ss:$16 sps:$4 sm:$0xff]  }
  0xc1   :  { %1470 = vmatpush2.bf16.msra.mxu0 %v3072_v57  ;;  %v3165_v57 = vld [vmem:[#allocation5 + $0x388] ss:$16 sps:$4 sm:$0xff]  }
  0xc2   :  { %1552 = vmatpush2.bf16.msra.mxu1 %v3069_v56  ;;  %1471 = vmatprep.subr.bf16.mxu0 %v3080_v59  ;;  %v3162_v56 = vld [vmem:[#allocation5 + $0x5c8] ss:$16 sps:$4 sm:$0xff]   ;;  %v3173_v59 = vld [vmem:[#allocation5 + $0x36c] ss:$16 sps:$4 sm:$0xff]  }
  0xc3   :  { %1553 = vmatprep.subr.bf16.mxu1 %v3077_v58  ;;  %v3170_v58 = vld [vmem:[#allocation5 + $0x5ac] ss:$16 sps:$4 sm:$0xff]  }
  0xc5   :  { %1472 = vmatpush2.bf16.msra.mxu0 %v3078_v61  ;;  %v3171_v61 = vld [vmem:[#allocation5 + $0x368] ss:$16 sps:$4 sm:$0xff]  }
  0xc6   :  { %1554 = vmatpush2.bf16.msra.mxu1 %v3075_v60  ;;  %1473 = vmatprep.subr.bf16.mxu0 %v3086_v63  ;;  %v3168_v60 = vld [vmem:[#allocation5 + $0x5a8] ss:$16 sps:$4 sm:$0xff]   ;;  %v3179_v63 = vld [vmem:[#allocation5 + $0x34c] ss:$16 sps:$4 sm:$0xff]  }
  0xc7   :  { %1555 = vmatprep.subr.bf16.mxu1 %v3083_v62  ;;  %v3176_v62 = vld [vmem:[#allocation5 + $0x58c] ss:$16 sps:$4 sm:$0xff]  }
  0xc9   :  { %1474 = vmatpush2.bf16.msra.mxu0 %v3084_v1  ;;  %v3177_v1 = vld [vmem:[#allocation5 + $0x348] ss:$16 sps:$4 sm:$0xff]  }
  0xca   :  { %1556 = vmatpush2.bf16.msra.mxu1 %v3081_v0  ;;  %1475 = vmatprep.subr.bf16.mxu0 %v3092_v3  ;;  %v3174_v0 = vld [vmem:[#allocation5 + $0x588] ss:$16 sps:$4 sm:$0xff]   ;;  %v3185_v3 = vld [vmem:[#allocation5 + $0x32c] ss:$16 sps:$4 sm:$0xff]  }
  0xcb   :  { %1557 = vmatprep.subr.bf16.mxu1 %v3089_v2  ;;  %v3182_v2 = vld [vmem:[#allocation5 + $0x56c] ss:$16 sps:$4 sm:$0xff]  }
  0xcd   :  { %1476 = vmatpush2.bf16.msra.mxu0 %v3090_v7  ;;  %v3183_v7 = vld [vmem:[#allocation5 + $0x328] ss:$16 sps:$4 sm:$0xff]  }
  0xce   :  { %1558 = vmatpush2.bf16.msra.mxu1 %v3087_v6  ;;  %1574 = vmatprep.subr.bf16.mxu0 %v3101_v9  ;;  %v3180_v6 = vld [vmem:[#allocation5 + $0x568] ss:$16 sps:$4 sm:$0xff]   ;;  %v3191_v9 = vld [vmem:[#allocation5 + $0x30c] ss:$16 sps:$4 sm:$0xff]  }
  0xcf   :  { %1559 = vmatprep.subr.bf16.mxu1 %v3098_v8  ;;  %v3188_v8 = vld [vmem:[#allocation5 + $0x54c] ss:$16 sps:$4 sm:$0xff]  }
  0xd0   :  { %1478 = vmatmul.mubr.bf16.vlgmr.msra.gmra.mxu0 %v3584_v10 }
  0xd1   :  { %1575 = vmatpush1.bf16.msra.mxu0 %v3099_v13  ;;  %1606 = vmatprep.mubr.bf16.mxu0 %v3565_v51  ;;  %v3128_v51 = vld [vmem:[#allocation5 + $0x48c] ss:$16 sps:$4 sm:$0xff]   ;;  %v3189_v13 = vld [vmem:[#allocation5 + $0x308] ss:$16 sps:$4 sm:$0xff]  }
  0xd2   :  { %1560 = vmatpush2.bf16.msra.mxu1 %v3096_v12  ;;  %1576 = vmatprep.subr.bf16.mxu0 %v3107_v16  ;;  %v3186_v12 = vld [vmem:[#allocation5 + $0x548] ss:$16 sps:$4 sm:$0xff]   ;;  %v3197_v16 = vld [vmem:[#allocation5 + $0x60c] ss:$16 sps:$4 sm:$0xff]  }
  0xd3   :  { %1561 = vmatprep.subr.bf16.mxu1 %v3104_v15  ;;  %v3194_v15 = vld [vmem:[#allocation5 + $0x52c] ss:$16 sps:$4 sm:$0xff]  }
  0xd5   :  { %1577 = vmatpush1.bf16.msra.mxu0 %v3105_v18  ;;  %v3195_v18 = vld [vmem:[#allocation5 + $0x608] ss:$16 sps:$4 sm:$0xff]  }
  0xd6   :  { %1562 = vmatpush2.bf16.msra.mxu1 %v3102_v17  ;;  %1578 = vmatprep.subr.bf16.mxu0 %v3113_v20  ;;  %v3192_v17 = vld [vmem:[#allocation5 + $0x528] ss:$16 sps:$4 sm:$0xff]  }
  0xd7   :  { %1617 = vmatprep.subr.bf16.mxu1 %v3110_v19  ;;  %v3200_v19 = vld [vmem:[#allocation5 + $0x50c] ss:$16 sps:$4 sm:$0xff]   ;;  %v3203_v20 = vld [vmem:[#allocation8 + $0x74] ss:$8 sps:$4 sm:$0xff]  }
  0xd9   :  { %1564 = vmatmul.mubr.bf16.vlgmr.msra.gmra.mxu1 %v3569_v4  ;;  %1579 = vmatpush1.bf16.msra.mxu0 %v3111_v22  ;;  %v3129_v4 = vld [vmem:[#allocation5 + $0x248] ss:$16 sps:$4 sm:$0xff]   ;;  %v3201_v22 = vld [vmem:[#allocation8 + $0x70] ss:$8 sps:$4 sm:$0xff]  }
  0xda   :  { %1618 = vmatpush1.bf16.msra.mxu1 %v3108_v21  ;;  %1580 = vmatprep.subr.bf16.mxu0 %v3119_v24  ;;  %v3198_v21 = vld [vmem:[#allocation5 + $0x508] ss:$16 sps:$4 sm:$0xff]   ;;  %v3204_v24 = vld [vmem:[#allocation8 + $0x60] ss:$8 sps:$4 sm:$0xff]  }
  0xdb   :  { %1619 = vmatprep.subr.bf16.mxu1 %v3116_v23  ;;  %1649 = vmatprep.mubr.bf16.mxu1 %v3581_v33  ;;  %v3143_v33 = vld [vmem:[#allocation5 + $0x20c] ss:$16 sps:$4 sm:$0xff]   ;;  %v3206_v23 = vld [vmem:[#allocation8 + $0x64] ss:$8 sps:$4 sm:$0xff]  }
  0xdd   :  { %1581 = vmatpush1.bf16.msra.mxu0 %v3117_v26  ;;  %v3212_v26 = vld [vmem:[#allocation8 + $0x44] ss:$8 sps:$4 sm:$0xff]  }
  0xde   :  { %1620 = vmatpush1.bf16.msra.mxu1 %v3114_v25  ;;  %1582 = vmatprep.subr.bf16.mxu0 %v3125_v28  ;;  %v3209_v25 = vld [vmem:[#allocation8 + $0x54] ss:$8 sps:$4 sm:$0xff]  }
  0xdf   :  { %1621 = vmatprep.subr.bf16.mxu1 %v3122_v27  ;;  %v3249_v27 = vld [vmem:[#allocation8 + $0x170] ss:$8 sps:$4 sm:$0xff]   ;;  %v3251_v28 = vld [vmem:[#allocation8 + $0x174] ss:$8 sps:$4 sm:$0xff]  }
  0xe1   :  { %1583 = vmatpush1.bf16.msra.mxu0 %v3123_v30  ;;  %v3215_v30 = vld [vmem:[#allocation8 + $0x34] ss:$8 sps:$4 sm:$0xff]  }
  0xe2   :  { %1622 = vmatpush1.bf16.msra.mxu1 %v3120_v29  ;;  %1584 = vmatprep.subr.bf16.mxu0 %v3131_v31  ;;  %v3254_v29 = vld [vmem:[#allocation8 + $0x164] ss:$8 sps:$4 sm:$0xff]  }
  0xe3   :  { %1623 = vmatprep.subr.bf16.mxu1 %v3128_v51  ;;  %v3213_v51 = vld [vmem:[#allocation8 + $0x30] ss:$8 sps:$4 sm:$0xff]   ;;  %v3218_v31 = vld [vmem:[#allocation8 + $0x24] ss:$8 sps:$4 sm:$0xff]  }
  0xe5   :  { %1585 = vmatpush1.bf16.msra.mxu0 %v3129_v4  ;;  %v3260_v4 = vld [vmem:[#allocation8 + $0x144] ss:$8 sps:$4 sm:$0xff]  }
  0xe6   :  { %1624 = vmatpush1.bf16.msra.mxu1 %v3126_v32  ;;  %1586 = vmatprep.subr.bf16.mxu0 %v3137_v35  ;;  %v3255_v32 = vld [vmem:[#allocation8 + $0x150] ss:$8 sps:$4 sm:$0xff]   ;;  %v3221_v35 = vld [vmem:[#allocation8 + $0x14] ss:$8 sps:$4 sm:$0xff]  }
  0xe7   :  { %1625 = vmatprep.subr.bf16.mxu1 %v3134_v34  ;;  %v3216_v34 = vld [vmem:[#allocation8 + $0x20] ss:$8 sps:$4 sm:$0xff]  }
  0xe9   :  { %1587 = vmatpush1.bf16.msra.mxu0 %v3135_v37  ;;  %v3263_v37 = vld [vmem:[#allocation8 + $0x134] ss:$8 sps:$4 sm:$0xff]  }
  0xea   :  { %1626 = vmatpush1.bf16.msra.mxu1 %v3132_v36  ;;  %1588 = vmatprep.subr.bf16.mxu0 %v3143_v33  ;;  %v3258_v36 = vld [vmem:[#allocation8 + $0x140] ss:$8 sps:$4 sm:$0xff]   ;;  %v3224_v33 = vld [vmem:[#allocation8 + $0x4] ss:$8 sps:$4 sm:$0xff]  }
  0xeb   :  { %1627 = vmatprep.subr.bf16.mxu1 %v3140_v38  ;;  %v3219_v38 = vld [vmem:[#allocation8 + $0x10] ss:$8 sps:$4 sm:$0xff]  }
  0xed   :  { %1589 = vmatpush1.bf16.msra.mxu0 %v3141_v40  ;;  %v3266_v40 = vld [vmem:[#allocation8 + $0x124] ss:$8 sps:$4 sm:$0xff]  }
  0xee   :  { %1628 = vmatpush1.bf16.msra.mxu1 %v3138_v39  ;;  %1590 = vmatprep.subr.bf16.mxu0 %v3149_v42  ;;  %v3261_v39 = vld [vmem:[#allocation8 + $0x130] ss:$8 sps:$4 sm:$0xff]   ;;  %v3227_v42 = vld [vmem:[#allocation8 + $0xf4] ss:$8 sps:$4 sm:$0xff]  }
  0xef   :  { %1629 = vmatprep.subr.bf16.mxu1 %v3146_v41  ;;  %v3222_v41 = vld [vmem:[#allocation8] ss:$8 sps:$4 sm:$0xff]  }
  0xf1   :  { %1591 = vmatpush2.bf16.msra.mxu0 %v3147_v44  ;;  %v3269_v44 = vld [vmem:[#allocation8 + $0x114] ss:$8 sps:$4 sm:$0xff]  }
  0xf2   :  { %1630 = vmatpush1.bf16.msra.mxu1 %v3144_v43  ;;  %1592 = vmatprep.subr.bf16.mxu0 %v3155_v46  ;;  %v3264_v43 = vld [vmem:[#allocation8 + $0x120] ss:$8 sps:$4 sm:$0xff]   ;;  %v3230_v46 = vld [vmem:[#allocation8 + $0xe4] ss:$8 sps:$4 sm:$0xff]  }
  0xf3   :  { %1631 = vmatprep.subr.bf16.mxu1 %v3152_v45  ;;  %v3225_v45 = vld [vmem:[#allocation8 + $0xf0] ss:$8 sps:$4 sm:$0xff]  }
  0xf5   :  { %1593 = vmatpush2.bf16.msra.mxu0 %v3153_v48  ;;  %v3272_v48 = vld [vmem:[#allocation8 + $0x104] ss:$8 sps:$4 sm:$0xff]  }
  0xf6   :  { %1632 = vmatpush1.bf16.msra.mxu1 %v3150_v47  ;;  %1594 = vmatprep.subr.bf16.mxu0 %v3161_v50  ;;  %v3267_v47 = vld [vmem:[#allocation8 + $0x110] ss:$8 sps:$4 sm:$0xff]   ;;  %v3233_v50 = vld [vmem:[#allocation8 + $0xd4] ss:$8 sps:$4 sm:$0xff]  }
  0xf7   :  { %1633 = vmatprep.subr.bf16.mxu1 %v3158_v49  ;;  %v3228_v49 = vld [vmem:[#allocation8 + $0xe0] ss:$8 sps:$4 sm:$0xff]  }
  0xf9   :  { %1595 = vmatpush2.bf16.msra.mxu0 %v3159_v53  ;;  %v3275_v53 = vld [vmem:[#allocation8 + $0x1f4] ss:$8 sps:$4 sm:$0xff]  }
  0xfa   :  { %1634 = vmatpush2.bf16.msra.mxu1 %v3156_v52  ;;  %1596 = vmatprep.subr.bf16.mxu0 %v3167_v55  ;;  %v3270_v52 = vld [vmem:[#allocation8 + $0x100] ss:$8 sps:$4 sm:$0xff]   ;;  %v3236_v55 = vld [vmem:[#allocation8 + $0xc4] ss:$8 sps:$4 sm:$0xff]  }
  0xfb   :  { %1635 = vmatprep.subr.bf16.mxu1 %v3164_v54  ;;  %v3231_v54 = vld [vmem:[#allocation8 + $0xd0] ss:$8 sps:$4 sm:$0xff]  }
  0xfd   :  { %1597 = vmatpush2.bf16.msra.mxu0 %v3165_v57  ;;  %v3278_v57 = vld [vmem:[#allocation8 + $0x1e4] ss:$8 sps:$4 sm:$0xff]  }
  0xfe   :  { %1636 = vmatpush2.bf16.msra.mxu1 %v3162_v56  ;;  %1598 = vmatprep.subr.bf16.mxu0 %v3173_v59  ;;  %v3273_v56 = vld [vmem:[#allocation8 + $0x1f0] ss:$8 sps:$4 sm:$0xff]   ;;  %v3239_v59 = vld [vmem:[#allocation8 + $0xb4] ss:$8 sps:$4 sm:$0xff]  }
  0xff   :  { %1637 = vmatprep.subr.bf16.mxu1 %v3170_v58  ;;  %v3234_v58 = vld [vmem:[#allocation8 + $0xc0] ss:$8 sps:$4 sm:$0xff]  }
 0x101   :  { %1599 = vmatpush2.bf16.msra.mxu0 %v3171_v61  ;;  %v3281_v61 = vld [vmem:[#allocation8 + $0x1d4] ss:$8 sps:$4 sm:$0xff]  }
 0x102   :  { %1638 = vmatpush2.bf16.msra.mxu1 %v3168_v60  ;;  %1600 = vmatprep.subr.bf16.mxu0 %v3179_v63  ;;  %v3276_v60 = vld [vmem:[#allocation8 + $0x1e0] ss:$8 sps:$4 sm:$0xff]   ;;  %v3242_v63 = vld [vmem:[#allocation8 + $0xa4] ss:$8 sps:$4 sm:$0xff]  }
 0x103   :  { %1639 = vmatprep.subr.bf16.mxu1 %v3176_v62  ;;  %v3237_v62 = vld [vmem:[#allocation8 + $0xb0] ss:$8 sps:$4 sm:$0xff]  }
 0x105   :  { %1601 = vmatpush2.bf16.msra.mxu0 %v3177_v1  ;;  %v3240_v1 = vld [vmem:[#allocation8 + $0xa0] ss:$8 sps:$4 sm:$0xff]  }
 0x106   :  { %1640 = vmatpush2.bf16.msra.mxu1 %v3174_v0  ;;  %1602 = vmatprep.subr.bf16.mxu0 %v3185_v3  ;;  %v3279_v0 = vld [vmem:[#allocation8 + $0x1d0] ss:$8 sps:$4 sm:$0xff]  }
 0x107   :  { %1641 = vmatprep.subr.bf16.mxu1 %v3182_v2  ;;  %v3245_v2 = vld [vmem:[#allocation8 + $0x94] ss:$8 sps:$4 sm:$0xff]   ;;  %v3243_v3 = vld [vmem:[#allocation8 + $0x90] ss:$8 sps:$4 sm:$0xff]  }
 0x109   :  { %1603 = vmatpush2.bf16.msra.mxu0 %v3183_v7  ;;  %v3246_v7 = vld [vmem:[#allocation8 + $0x80] ss:$8 sps:$4 sm:$0xff]  }
 0x10a   :  { %1642 = vmatpush2.bf16.msra.mxu1 %v3180_v6  ;;  %1604 = vmatprep.subr.bf16.mxu0 %v3191_v9  ;;  %v3248_v6 = vld [vmem:[#allocation8 + $0x84] ss:$8 sps:$4 sm:$0xff]   ;;  %v3282_v9 = vld [vmem:[#allocation8 + $0x1c0] ss:$8 sps:$4 sm:$0xff]  }
 0x10b   :  { %1643 = vmatprep.subr.bf16.mxu1 %v3188_v8  ;;  %v3284_v8 = vld [vmem:[#allocation8 + $0x1c4] ss:$8 sps:$4 sm:$0xff]  }
 0x10d   :  { %1605 = vmatpush2.bf16.msra.mxu0 %v3189_v13  ;;  %v3285_v13 = vld [vmem:[#allocation8 + $0x1b0] ss:$8 sps:$4 sm:$0xff]  }
 0x10e   :  { %1644 = vmatpush2.bf16.msra.mxu1 %v3186_v12  ;;  %1674 = vmatprep.subr.bf16.mxu0 %v3197_v16  ;;  %v3287_v12 = vld [vmem:[#allocation8 + $0x1b4] ss:$8 sps:$4 sm:$0xff]   ;;  %v3288_v16 = vld [vmem:[#allocation8 + $0x1a0] ss:$8 sps:$4 sm:$0xff]  }
 0x10f   :  { %1645 = vmatprep.subr.bf16.mxu1 %v3194_v15  ;;  %v3290_v15 = vld [vmem:[#allocation8 + $0x1a4] ss:$8 sps:$4 sm:$0xff]  }
 0x110   :  { %1607 = vmatmul.mubr.bf16.vlgmr.msra.gmra.mxu0 %v3571_v5  ;;  %v3207_v5 = vld [vmem:[#allocation8 + $0x50] ss:$8 sps:$4 sm:$0xff]  }
 0x111   :  { %1675 = vmatpush1.bf16.msra.mxu0 %v3195_v18  ;;  %1692 = vmatprep.mubr.bf16.mxu0 %v3485_v11  ;;  %v3210_v11 = vld [vmem:[#allocation8 + $0x40] ss:$8 sps:$4 sm:$0xff]   ;;  %v3291_v18 = vld [vmem:[#allocation8 + $0x190] ss:$8 sps:$4 sm:$0xff]  }
 0x112   :  { %1646 = vmatpush2.bf16.msra.mxu1 %v3192_v17  ;;  %2111 = vmatprep.subr.bf16.mxu0 %v3203_v20  ;;  %v3293_v17 = vld [vmem:[#allocation8 + $0x194] ss:$8 sps:$4 sm:$0xff]   ;;  %v3294_v20 = vld [vmem:[#allocation8 + $0x180] ss:$8 sps:$4 sm:$0xff]  }
 0x113   :  { %1647 = vmatprep.subr.bf16.mxu1 %v3200_v19  ;;  %v3296_v19 = vld [vmem:[#allocation8 + $0x184] ss:$8 sps:$4 sm:$0xff]  }
 0x116   :  { %1648 = vmatpush2.bf16.msra.mxu1 %v3198_v21 }
 0x117   :  { %2154 = vmatprep.subr.bf16.mxu1 %v3251_v28 }
 0x118   :  { %2728 = vmatmul.mubr.msk.bf16.vlgmr.msra.gmra.mxu0 %vm1355_vm0, %v3576_v14  ;;  %v3257_v14 = vld [vmem:[#allocation8 + $0x154] ss:$8 sps:$4 sm:$0xff]  }
 0x119   :  { %1650 = vmatmul.mubr.bf16.vlgmr.msra.gmra.mxu1 %v3584_v10  ;;  %2112 = vmatpush1.bf16.msra.mxu0 %v3201_v22  ;;  %v3252_v10 = vld [vmem:[#allocation8 + $0x160] ss:$8 sps:$4 sm:$0xff]   ;;  %v320_v22 = vlaneseq }
 0x11a   :  { %2113 = vmatprep.subr.bf16.mxu0 %v3206_v23  ;;  %2155 = vmatpush1.bf16.msra.mxu1 %v3249_v27 }
 0x11b   :  { %2156 = vmatprep.subr.bf16.mxu1 %v3254_v29 }
 0x11d   :  { %2114 = vmatpush1.bf16.msra.mxu0 %v3204_v24  ;;  %v3595_v24 = vshrl.u32 %v320_v22, 7 }
 0x11e   :  { %2115 = vmatprep.subr.bf16.mxu0 %v3209_v25  ;;  %2157 = vmatpush1.bf16.msra.mxu1 %v3252_v10 }
 0x11f   :  { %2158 = vmatprep.subr.bf16.mxu1 %v3257_v14  ;;  %v322_v27 = vsub.s32 0, %v3595_v24 }
 0x121   :  { %2116 = vmatpush1.bf16.msra.mxu0 %v3207_v5 }
 0x122   :  { %2117 = vmatprep.subr.bf16.mxu0 %v3212_v26  ;;  %2159 = vmatpush1.bf16.msra.mxu1 %v3255_v32  ;;  %v326_v26 = vsub.s32 1, %v3595_v24 }
 0x123   :  { %2160 = vmatprep.subr.bf16.mxu1 %v3260_v4 }
 0x125   :  { %2118 = vmatpush1.bf16.msra.mxu0 %v3210_v11  ;;  %v318_v11 = vld [vmem:[#allocation7] sm:$0xf] }
 0x126   :  { %2119 = vmatprep.subr.bf16.mxu0 %v3215_v30  ;;  %2161 = vmatpush1.bf16.msra.mxu1 %v3258_v36  ;;  %v327_v30 = vrot.slane %v318_v11, %v326_v26  ;;  %v323_v10 = vrot.slane %v318_v11, %v322_v27 }
 0x127   :  { %2162 = vmatprep.subr.bf16.mxu1 %v3263_v37 }
 0x129   :  { %2120 = vmatpush1.bf16.msra.mxu0 %v3213_v51 }
 0x12a   :  { %2121 = vmatprep.subr.bf16.mxu0 %v3218_v31  ;;  %2163 = vmatpush1.bf16.msra.mxu1 %v3261_v39 }
 0x12b   :  { %2164 = vmatprep.subr.bf16.mxu1 %v3266_v40 }
 0x12d   :  { %2122 = vmatpush1.bf16.msra.mxu0 %v3216_v34 }
 0x12e   :  { %2123 = vmatprep.subr.bf16.mxu0 %v3221_v35  ;;  %2165 = vmatpush1.bf16.msra.mxu1 %v3264_v43 }
 0x12f   :  { %2166 = vmatprep.subr.bf16.mxu1 %v3269_v44 }
 0x131   :  { %2124 = vmatpush1.bf16.msra.mxu0 %v3219_v38 }
 0x132   :  { %2125 = vmatprep.subr.bf16.mxu0 %v3224_v33  ;;  %2167 = vmatpush1.bf16.msra.mxu1 %v3267_v47 }
 0x133   :  { %2168 = vmatprep.subr.bf16.mxu1 %v3272_v48 }
 0x135   :  { %2126 = vmatpush1.bf16.msra.mxu0 %v3222_v41 }
 0x136   :  { %2127 = vmatprep.subr.bf16.mxu0 %v3227_v42  ;;  %2169 = vmatpush1.bf16.msra.mxu1 %v3270_v52 }
 0x137   :  { %2170 = vmatprep.subr.bf16.mxu1 %v3275_v53 }
 0x139   :  { %2128 = vmatpush2.bf16.msra.mxu0 %v3225_v45 }
 0x13a   :  { %2129 = vmatprep.subr.bf16.mxu0 %v3230_v46  ;;  %2171 = vmatpush2.bf16.msra.mxu1 %v3273_v56 }
 0x13b   :  { %2172 = vmatprep.subr.bf16.mxu1 %v3278_v57 }
 0x13d   :  { %2130 = vmatpush2.bf16.msra.mxu0 %v3228_v49 }
 0x13e   :  { %2131 = vmatprep.subr.bf16.mxu0 %v3233_v50  ;;  %2173 = vmatpush2.bf16.msra.mxu1 %v3276_v60 }
 0x13f   :  { %2174 = vmatprep.subr.bf16.mxu1 %v3281_v61 }
 0x141   :  { %2132 = vmatpush2.bf16.msra.mxu0 %v3231_v54 }
 0x142   :  { %2133 = vmatprep.subr.bf16.mxu0 %v3236_v55  ;;  %2175 = vmatpush2.bf16.msra.mxu1 %v3279_v0  ;;  %v330_v0 = vsub.s32 2, %v3595_v24 }
 0x143   :  { %2176 = vmatprep.subr.bf16.mxu1 %v3284_v8 }
 0x145   :  { %2134 = vmatpush2.bf16.msra.mxu0 %v3234_v58 }
 0x146   :  { %2135 = vmatprep.subr.bf16.mxu0 %v3239_v59  ;;  %2177 = vmatpush2.bf16.msra.mxu1 %v3282_v9 }
 0x147   :  { %2178 = vmatprep.subr.bf16.mxu1 %v3287_v12 }
 0x149   :  { %2136 = vmatpush2.bf16.msra.mxu0 %v3237_v62 }
 0x14a   :  { %2137 = vmatprep.subr.bf16.mxu0 %v3242_v63  ;;  %2179 = vmatpush2.bf16.msra.mxu1 %v3285_v13  ;;  %v334_v63 = vsub.s32 3, %v3595_v24 }
 0x14b   :  { %2180 = vmatprep.subr.bf16.mxu1 %v3290_v15 }
 0x14d   :  { %2138 = vmatpush2.bf16.msra.mxu0 %v3240_v1 }
 0x14e   :  { %2139 = vmatprep.subr.bf16.mxu0 %v3245_v2  ;;  %2181 = vmatpush2.bf16.msra.mxu1 %v3288_v16 }
 0x14f   :  { %2182 = vmatprep.subr.bf16.mxu1 %v3293_v17 }
 0x150   :  { %v1393_v25 = vpop.f32.mrf.mxu0 }
 0x151   :  { %2140 = vmatpush2.bf16.msra.mxu0 %v3243_v3  ;;  %v1436_v21 = vpop.f32.mrf.mxu1  ;;  %v1394_v32 = vadd.f32 %v1393_v25, %v323_v10 }
 0x152   :  { %2141 = vmatprep.subr.bf16.mxu0 %v3248_v6  ;;  %2183 = vmatpush2.bf16.msra.mxu1 %v3291_v18  ;;  %v1395_v28 = vpop.f32.mrf.mxu0  ;;  %v335_v6 = vrot.slane %v318_v11, %v334_v63 }
 0x153   :  { %2184 = vmatprep.subr.bf16.mxu1 %v3296_v19  ;;  %v1438_v23 = vpop.f32.mrf.mxu1  ;;  %v1396_v31 = vadd.f32 %v1395_v28, %v327_v30  ;;  %v1437_v33 = vadd.f32 %v1436_v21, %v1394_v32 }
 0x154   :  { %v1397_v14 = vpop.f32.mrf.mxu0 }
 0x155   :  { %2142 = vmatpush2.bf16.msra.mxu0 %v3246_v7  ;;  %v1440_v5 = vpop.f32.mrf.mxu1  ;;  %v1398_v34 = vadd.f32 %v1397_v14, %v323_v10  ;;  %v1439_v37 = vadd.f32 %v1438_v23, %v1396_v31  ;;  %v331_v7 = vrot.slane %v318_v11, %v330_v0 }
 0x156   :  { %2185 = vmatpush2.bf16.msra.mxu1 %v3294_v20  ;;  %v1399_v4 = vpop.f32.mrf.mxu0 }
 0x157   :  { %v1442_v29 = vpop.f32.mrf.mxu1  ;;  %v1400_v38 = vadd.f32 %v1399_v4, %v327_v30  ;;  %v1441_v40 = vadd.f32 %v1440_v5, %v1398_v34 }
 0x159   :  { %v1522_v51 = vpop.f32.mrf.mxu1  ;;  %v1443_v45 = vadd.f32 %v1442_v29, %v1400_v38 }
 0x15b   :  { %v1524_v35 = vpop.f32.mrf.mxu1 }
 0x15d   :  { %v1526_v42 = vpop.f32.mrf.mxu1 }
 0x15f   :  { %v1528_v52 = vpop.f32.mrf.mxu1 }
 0x190   :  { %v1479_v36 = vpop.f32.mrf.mxu0 }
 0x191   :  { %v1480_v43 = vadd.f32 %v1479_v36, %v1437_v33 }
 0x192   :  { %v1481_v39 = vpop.f32.mrf.mxu0 }
 0x193   :  { %v1482_v41 = vadd.f32 %v1481_v39, %v1439_v37  ;;  %v1523_v53 = vadd.f32 %v1522_v51, %v1480_v43  ;;  %v3299_v43 = vld [vmem:[#allocation10 + $0x70] sm:$0xff]  }
 0x194   :  { %v1483_v44 = vpop.f32.mrf.mxu0 }
 0x195   :  { %v1484_v46 = vadd.f32 %v1483_v44, %v1441_v40  ;;  %v1525_v48 = vadd.f32 %v1524_v35, %v1482_v41  ;;  %v1703_v58 = vmax.f32 %v1523_v53, 0.0  ;;  %v3297_v41 = vld [vmem:[#allocation10 + $0x78] sm:$0xff]   ;;  %v3300_v44 = vld [vmem:[#allocation10 + $0x30] sm:$0xff]  }
 0x196   :  { %v1485_v47 = vpop.f32.mrf.mxu0  ;;  %2828 = vmatprep.subr.bf16.mxu0 %v3297_v41  ;;  %v3308_v53 = vld [vmem:[#allocation10 + $0x10] sm:$0xff]  }
 0x197   :  { %v1527_v49 = vadd.f32 %v1526_v42, %v1484_v46  ;;  %v1486_v50 = vadd.f32 %v1485_v47, %v1443_v45  ;;  %v1704_v56 = vmax.f32 %v1525_v48, 0.0  ;;  %v3298_v42 = vld [vmem:[#allocation10 + $0x38] sm:$0xff]   ;;  %v3301_v45 = vld [vmem:[#allocation10 + $0x68] sm:$0xff]   ;;  %v3303_v47 = vld [vmem:[#allocation10 + $0x60] sm:$0xff]  }
 0x198   :  { %v3302_v46 = vld [vmem:[#allocation10 + $0x28] sm:$0xff]   ;;  %v3304_v48 = vld [vmem:[#allocation10 + $0x20] sm:$0xff]  }
 0x199   :  { %v1529_v54 = vadd.f32 %v1528_v52, %v1486_v50  ;;  %v1707_v55 = vmax.f32 %v1527_v49, 0.0  ;;  %v1565_v61 = vpop.f32.mrf.mxu1  ;;  %v3305_v49 = vld [vmem:[#allocation10 + $0x58] sm:$0xff]   ;;  %v3307_v52 = vld [vmem:[#allocation10 + $0x50] sm:$0xff]  }
 0x19a   :  { %v1566_v15 = vadd.f32 %v1565_v61, %v331_v7  ;;  %v3306_v50 = vld [vmem:[#allocation10 + $0x18] sm:$0xff]   ;;  %v3315_v61 = vld [vmem:[#allocation11 + $0x28] sm:$0xff]  }
 0x19b   :  { %v1708_v57 = vmax.f32 %v1529_v54, 0.0  ;;  %v1711_v60 = vpack.c.bf16 %v1707_v55, %v1703_v58  ;;  %v1567_v62 = vpop.f32.mrf.mxu1  ;;  %v3309_v54 = vld [vmem:[#allocation10 + $0x48] sm:$0xff]   ;;  %v3313_v58 = vld [vmem:[#allocation11 + $0x38] sm:$0xff]  }
 0x19c   :  { %v1568_v13 = vadd.f32 %v1567_v62, %v335_v6  ;;  %v3310_v55 = vld [vmem:[#allocation10 + $0x8] sm:$0xff]   ;;  %v3316_v62 = vld [vmem:[#allocation11 + $0x20] sm:$0xff]  }
 0x19d   :  { %v1712_v59 = vpack.c.bf16 %v1708_v57, %v1704_v56  ;;  %v1569_v2 = vpop.f32.mrf.mxu1  ;;  %v3311_v56 = vld [vmem:[#allocation10 + $0x40] sm:$0xff]  }
 0x19e   :  { %v1570_v18 = vadd.f32 %v1569_v2, %v331_v7  ;;  %v3312_v57 = vld [vmem:[#allocation10] sm:$0xff]  }
 0x19f   :  { %2143 = vmatprep.mubr.bf16.mxu0 %v1712_v59  ;;  %v1571_v9 = vpop.f32.mrf.mxu1  ;;  %v3486_v59 = vmov 0.0  }
 0x1a0   :  { %2144 = vmatmul.mubr.bf16.vlgmr.msra.gmra.mxu0 %v1711_v60  ;;  %v1572_v23 = vadd.f32 %v1571_v9, %v335_v6  ;;  %2859 = vmatprep.subr.bf16.mxu1 %v3486_v59  ;;  %v3314_v60 = vld [vmem:[#allocation11 + $0x30] sm:$0xff]  }
 0x1a1   :  { %2829 = vmatpush3.bf16.msra.mxu0 %v3298_v42 }
 0x1a2   :  { %2830 = vmatprep.subr.bf16.mxu0 %v3299_v43 }
 0x1a5   :  { %2831 = vmatpush3.bf16.msra.mxu0 %v3300_v44 }
 0x1a6   :  { %2832 = vmatprep.subr.bf16.mxu0 %v3301_v45 }
 0x1a9   :  { %2833 = vmatpush3.bf16.msra.mxu0 %v3302_v46 }
 0x1aa   :  { %2834 = vmatprep.subr.bf16.mxu0 %v3303_v47 }
 0x1ad   :  { %2835 = vmatpush3.bf16.msra.mxu0 %v3304_v48 }
 0x1ae   :  { %2836 = vmatprep.subr.bf16.mxu0 %v3305_v49 }
 0x1b1   :  { %2837 = vmatpush3.bf16.msra.mxu0 %v3306_v50 }
 0x1b2   :  { %2838 = vmatprep.subr.bf16.mxu0 %v3307_v52 }
 0x1b5   :  { %2839 = vmatpush3.bf16.msra.mxu0 %v3308_v53 }
 0x1b6   :  { %2840 = vmatprep.subr.bf16.mxu0 %v3309_v54 }
 0x1b9   :  { %2841 = vmatpush3.bf16.msra.mxu0 %v3310_v55 }
 0x1ba   :  { %2842 = vmatprep.subr.bf16.mxu0 %v3311_v56 }
 0x1bd   :  { %2843 = vmatpush3.bf16.msra.mxu0 %v3312_v57 }
 0x1d0   :  { %v1608_v1 = vpop.f32.mrf.mxu0 }
 0x1d1   :  { %v1609_v20 = vadd.f32 %v1608_v1, %v1566_v15  ;;  %v1779_v1 = vld [vmem:[%s3628_s4] sm:$0x3] }
 0x1d2   :  { %v1610_v3 = vpop.f32.mrf.mxu0  ;;  %v1784_v6 = vrot.slane %v1779_v1, %v322_v27  ;;  %v3317_v27 = vld [vmem:[#allocation11 + $0x18] sm:$0xff]  }
 0x1d3   :  { %v1611_v19 = vadd.f32 %v1610_v3, %v1568_v13  ;;  %v1788_v3 = vrot.slane %v1779_v1, %v326_v26 }
 0x1d4   :  { %v1612_v8 = vpop.f32.mrf.mxu0 }
 0x1d5   :  { %v1613_v25 = vadd.f32 %v1612_v8, %v1570_v18 }
 0x1d6   :  { %v1614_v12 = vpop.f32.mrf.mxu0 }
 0x1d7   :  { %v1615_v10 = vadd.f32 %v1614_v12, %v1572_v23 }
 0x1d8   :  { %v1694_v17 = vpop.f32.mrf.mxu0 }
 0x1d9   :  { %v1651_v16 = vpop.f32.mrf.mxu1 }
 0x1da   :  { %v1696_v22 = vpop.f32.mrf.mxu0  ;;  %v1652_v28 = vadd.f32 %v1651_v16, %v1609_v20 }
 0x1db   :  { %v1653_v21 = vpop.f32.mrf.mxu1 }
 0x1dc   :  { %v1654_v5 = vadd.f32 %v1653_v21, %v1611_v19  ;;  %v1698_v30 = vpop.f32.mrf.mxu0  ;;  %v1695_v34 = vadd.f32 %v1694_v17, %v1652_v28 }
 0x1dd   :  { %v1655_v29 = vpop.f32.mrf.mxu1 }
 0x1de   :  { %v1656_v11 = vadd.f32 %v1655_v29, %v1613_v25  ;;  %v1700_v51 = vpop.f32.mrf.mxu0  ;;  %v1697_v31 = vadd.f32 %v1696_v22, %v1654_v5  ;;  %v1705_v33 = vmax.f32 %v1695_v34, 0.0  ;;  %v3318_v29 = vld [vmem:[#allocation11 + $0x10] sm:$0xff]  }
 0x1df   :  { %v1657_v14 = vpop.f32.mrf.mxu1 }
 0x1e0   :  { %v1699_v32 = vadd.f32 %v1698_v30, %v1656_v11  ;;  %v1658_v4 = vadd.f32 %v1657_v14, %v1615_v10  ;;  %v1706_v37 = vmax.f32 %v1697_v31, 0.0  ;;  %v3319_v30 = vld [vmem:[#allocation11 + $0x8] sm:$0xff]   ;;  %v3320_v10 = vld [vmem:[#allocation11] sm:$0xff]  }
 0x1e1   :  { %v2793_v31 = vld [vmem:[%s3630_s6] ss:$0 sm:$0xff]  ;;  %s3441_s6 = scalar_lea.vmem %s2510_s25, 128 }
 0x1e2   :  { %v1701_v35 = vadd.f32 %v1700_v51, %v1658_v4  ;;  %v1709_v36 = vmax.f32 %v1699_v32, 0.0  ;;  %p3442_p2 = scmp.ne.s32.totalorder %s2510_s25, %s3441_s6  ;;  %p3447_p4 = scmp.lt.s32.totalorder %s3441_s6, %s3441_s6 }
 0x1e4   :  { %v1710_v38 = vmax.f32 %v1701_v35, 0.0  ;;  %v1713_v40 = vpack.c.bf16 %v1709_v36, %v1705_v33  ;;  %p3448_p5 = por %p3447_p4, %p3446_p3 }
 0x1e6   :  { %v1714_v39 = vpack.c.bf16 %v1710_v38, %v1706_v37  ;;  %p3449_p6 = pnand %p3448_p5, %p3442_p2 }
 0x1e8   :  { %2186 = vmatprep.mubr.bf16.mxu1 %v1714_v39 }
 0x1e9   :  { %2187 = vmatmul.mubr.bf16.vlgmr.msra.gmra.mxu1 %v1713_v40  ;;  %v2810_v40 = vld [vmem:[%s3632_s8] ss:$0 sm:$0xff] }
 0x1ea   :  { %2860 = vmatpush3.bf16.msra.mxu1 %v3313_v58  ;;  %2875 = vmatprep.mubr.msk.bf16.mxu1 %vm3487_vm1, %v3486_v59 }
 0x1eb   :  { %2861 = vmatprep.subr.bf16.mxu1 %v3486_v59 }
 0x1ee   :  { %2862 = vmatpush3.bf16.msra.mxu1 %v3314_v60 }
 0x1ef   :  { %2863 = vmatprep.subr.bf16.mxu1 %v3486_v59 }
 0x1f2   :  { %2864 = vmatpush3.bf16.msra.mxu1 %v3315_v61 }
 0x1f3   :  { %2865 = vmatprep.subr.bf16.mxu1 %v3486_v59 }
 0x1f6   :  { %2866 = vmatpush3.bf16.msra.mxu1 %v3316_v62 }
 0x1f7   :  { %2867 = vmatprep.subr.bf16.mxu1 %v3486_v59 }
 0x1fa   :  { %2868 = vmatpush3.bf16.msra.mxu1 %v3317_v27 }
 0x1fb   :  { %2869 = vmatprep.subr.bf16.mxu1 %v3486_v59 }
 0x1fe   :  { %2870 = vmatpush3.bf16.msra.mxu1 %v3318_v29 }
 0x1ff   :  { %2871 = vmatprep.subr.bf16.mxu1 %v3486_v59 }
 0x202   :  { %2872 = vmatpush3.bf16.msra.mxu1 %v3319_v30 }
 0x203   :  { %2873 = vmatprep.subr.bf16.mxu1 %v3486_v59 }
 0x206   :  { %2874 = vmatpush3.bf16.msra.mxu1 %v3320_v10 }
 0x260   :  { %v2145_v63 = vpop.f32.mrf.mxu0 }
 0x261   :  { %v2146_v15 = vadd.f32 %v2145_v63, %v1784_v6 }
 0x262   :  { %v2147_v0 = vpop.f32.mrf.mxu0 }
 0x263   :  { %v2148_v12 = vadd.f32 %v2147_v0, %v1788_v3 }
 0x264   :  { %v2149_v2 = vpop.f32.mrf.mxu0 }
 0x265   :  { %v2150_v13 = vadd.f32 %v2149_v2, %v1784_v6 }
 0x266   :  { %v2151_v8 = vpop.f32.mrf.mxu0 }
 0x267   :  { %v2152_v17 = vadd.f32 %v2151_v8, %v1788_v3 }
 0x2a9   :  { %v2188_v7 = vpop.f32.mrf.mxu1 }
 0x2aa   :  { %v2189_v20 = vadd.f32 %v2188_v7, %v2146_v15 }
 0x2ab   :  { %v2190_v9 = vpop.f32.mrf.mxu1 }
 0x2ac   :  { %v2191_v18 = vadd.f32 %v2190_v9, %v2148_v12  ;;  %v2197_v26 = vmax.f32 %v2189_v20, 0.0 }
 0x2ad   :  { %v2192_v16 = vpop.f32.mrf.mxu1 }
 0x2ae   :  { %v2193_v19 = vadd.f32 %v2192_v16, %v2150_v13  ;;  %v2198_v25 = vmax.f32 %v2191_v18, 0.0 }
 0x2af   :  { %v2194_v21 = vpop.f32.mrf.mxu1 }
 0x2b0   :  { %v2195_v22 = vadd.f32 %v2194_v21, %v2152_v17  ;;  %v2199_v23 = vmax.f32 %v2193_v19, 0.0 }
 0x2b2   :  { %v2200_v5 = vmax.f32 %v2195_v22, 0.0  ;;  %v2201_v24 = vpack.c.bf16 %v2199_v23, %v2197_v26 }
 0x2b4   :  { %v2202_v28 = vpack.c.bf16 %v2200_v5, %v2198_v25 }
 0x2b6   :  { %2370 = vmatprep.mubr.bf16.mxu0 %v2202_v28 }
 0x2b7   :  { %2371 = vmatmul.mubr.bf16.vlgmr.msra.gmra.mxu0 %v2201_v24 }
 0x377   :  { %v2844_v11 = vpop.f32.mrf.mxu0 }
 0x379   :  { %v2845_v14 = vpop.f32.mrf.mxu0 }
 0x37a   :  { %v2846_v51 = vadd.f32 %v2845_v14, %v2844_v11 }
 0x37b   :  { %v2847_v32 = vpop.f32.mrf.mxu0 }
 0x37c   :  { %v2373_v34 = vadd.f32 %v2846_v51, %v2793_v31 }
 0x37d   :  { %v2848_v4 = vpop.f32.mrf.mxu0 }
 0x37e   :  { %v2849_v35 = vadd.f32 %v2848_v4, %v2847_v32  ;;  %v2379_v37 = vmax.f32 %v2373_v34, 0.0 }
 0x380   :  { %v2376_v36 = vadd.f32 %v2849_v35, %v2793_v31 }
 0x382   :  { %v2380_v38 = vmax.f32 %v2376_v36, 0.0 }
 0x384   :  { %v2381_v33 = vpack.c.bf16 %v2380_v38, %v2379_v37 }
 0x386   :  { %2876 = vmatmul.mubr.bf16.vlgmr.msra.gmra.mxu1 %v2381_v33 }
 0x446   :  { %v2487_v39 = vpop.f32.mrf.mxu1 }
 0x447   :  { %v2488_v43 = vadd.f32 %v2810_v40, %v2487_v39 }
 0x448   :  { %v2877_v41 = vpop.f32.mrf.mxu1 }
 0x44a   :  { %v2490_v42 = vpop.f32.mrf.mxu1 }
 0x44b   :  { %v2491_v44 = vadd.f32 %v2810_v40, %v2490_v42 }
 0x44c   :  { %v2878_v45 = vpop.f32.mrf.mxu1 }
 0x44d   :  { %v2826_v46 = vpack.c.bf16 %v2491_v44, %v2488_v43 }
 0x44f   :  { %2827 = vst [vmem:[#allocation13] sm:$0xff] %v2826_v46  }
 0x450   :  { %3452 = shalt.err (!%p3449_p6)
}
 0x451   :  { %2515 = dma.vmem_to_hbm [thread:$0]  %s2510_s25, 128, %s3633_s9, [#allocation4], %s3482_s0, %s3482_s0, %s3483_s15  }
 0x452   :  { %3469 = dma.done.wait [#allocation4], 128  }
 0x453   :  { %3470 = vsyncadd [#allocation4], 4294967168 }
 0x454   :  { %2519 = vsyncpa [#allocation3], 1 }
 0x455   :  { %2520 = vsyncpa [#allocation6], 1 }
 0x456   :  { %2521 = vsyncpa [#allocation9], 1 }
 0x457   :  { %2522 = vsyncpa [#allocation12], 1 }
 0x458   :  { %2523 = vsyncpa [#allocation4], 1 }

</bundles_post_ra>
